<compile_context>
chip_gen: v5e
topology: v5e:2x2
jax: 0.10.0
libtpu: 0.0.40
codegen_flags: <defaults>
</compile_context>

<pallas_src>
from functools import partial

import jax
import jax.numpy as jnp
from jax import lax
from jax.experimental import pallas as pl
from jax.experimental.pallas import tpu as pltpu

COMPUTE_DTYPE = jnp.bfloat16   # MXU operand dtype (accumulation is always f32)
LN_EPS = 1e-5
LANE = 128


def _round_up(v, m):
    return (v + m - 1) // m * m


def _tile_heads(a3, reps):
    """(B, N, C) -> (B, reps*N, C); copies stacked along rows within each batch."""
    b, n, c = a3.shape
    return jnp.broadcast_to(a3[:, None, :, :], (b, reps, n, c)).reshape(b, reps * n, c)


def transformer_kernel(x_ref, hm_ref,
                       g1_ref, be1_ref,
                       wq_ref, wk_ref, wv_ref, wp_ref, bp_ref,
                       g2_ref, be2_ref,
                       w1_ref, b1_ref, w2_ref, b2_ref,
                       o_ref, *, seq, real_c):
    """One grid step == one TransformerLayer.  Activations stay resident in o_ref."""
    layer = pl.program_id(0)

    # Load input activations into the resident output block on the first layer only.
    @pl.when(layer == 0)
    def _():
        o_ref[...] = x_ref[...]

    M, Cp = o_ref.shape            # M = batch * seq rows, Cp = padded (128-lane) channels
    N = seq
    B = M // N
    width = hm_ref.shape[0]        # Hp * N : packed per-batch score width

    x = o_ref[...].astype(jnp.float32)      # residual stream (f32); padded channels stay 0
    inv_c = 1.0 / float(real_c)

    def layernorm(z, g, b):
        # Padded channels of z are exactly 0, so sums over Cp equal sums over the real C
        # channels -> single-pass E[x^2] - mean^2 (no channel mask needed).
        mu = jnp.sum(z, axis=-1, keepdims=True) * inv_c
        ex2 = jnp.sum(z * z, axis=-1, keepdims=True) * inv_c
        var = ex2 - mu * mu
        return (z - mu) * lax.rsqrt(var + LN_EPS) * g + b      # padded gamma/beta == 0

    def mm(a, w):                   # bf16 x bf16 -> f32 accumulate on the MXU
        return jnp.dot(a.astype(COMPUTE_DTYPE), w, preferred_element_type=jnp.float32)

    hm = hm_ref[...]                # (width, Cp) bf16 0/1: head(packed row) == head(channel)

    # ------------------------------ attention (pre-LN) ------------------------------
    xn = layernorm(x, g1_ref[...], be1_ref[...])

    q = mm(xn, wq_ref[...])         # (M, Cp); 1/sqrt(head_dim) already folded into Wq
    k = mm(xn, wk_ref[...])
    v = mm(xn, wv_ref[...])

    q3 = q.reshape(B, N, Cp).astype(COMPUTE_DTYPE)
    k3 = k.reshape(B, N, Cp)
    v3 = v.reshape(B, N, Cp)

    # Per-batch head-block-diagonal K/V slabs (bf16): packed row h*N + j holds key/value
    # row j masked to head h's channels, so ONE batched MXU matmul yields all heads'
    # scores and p @ Vp directly yields the head-concatenated output.
    kp = _tile_heads(k3, width // N).astype(COMPUTE_DTYPE) * hm     # (B, width, Cp)
    vp = _tile_heads(v3, width // N).astype(COMPUTE_DTYPE) * hm

    s = jnp.einsum('bqc,bkc->bqk', q3, kp,
                   preferred_element_type=jnp.float32)              # (B, N, width)

    # Segmented softmax: each block of N columns is one head's keys.  The row max is
    # shared across head segments (exact in the common case); the denominator clamp
    # below keeps a pathologically underflowed segment finite (-> ~0 output, not NaN).
    s = s - jnp.max(s, axis=-1, keepdims=True)
    p = jnp.exp(s)                                                  # (B, N, width) f32
    pb = p.astype(COMPUTE_DTYPE)                                    # PV operand
    p2 = p.reshape(M, width).astype(COMPUTE_DTYPE)                  # denominator operand

    attn_un = jnp.einsum('bqk,bkc->bqc', pb, vp,
                         preferred_element_type=jnp.float32)        # (B, N, Cp)

    # Per-head softmax denominators broadcast straight to channels with one matmul
    # (hm doubles as the segment -> channel one-hot).  Normalize AFTER the PV matmul.
    denom = jnp.dot(p2, hm, preferred_element_type=jnp.float32)     # (M, Cp)
    denom = jnp.maximum(denom, 1e-30)
    attn = attn_un.reshape(M, Cp) * pl.reciprocal(denom, approx=False)

    attn = mm(attn, wp_ref[...]) + bp_ref[...]
    x = x + attn

    # -------------------------------- MLP (pre-LN) ----------------------------------
    xn2 = layernorm(x, g2_ref[...], be2_ref[...])
    hid = jnp.maximum(mm(xn2, w1_ref[...]) + b1_ref[...], 0.0)      # relu
    mlp = mm(hid, w2_ref[...]) + b2_ref[...]

    o_ref[...] = (x + mlp).astype(o_ref.dtype)


def transformer_forward(x, params, num_heads):
    B, N, C = x.shape
    L = params["wq"].shape[0]
    Hd = params["w1"].shape[-1]
    d = C // num_heads
    M = B * N

    # Lane-dense padding (biggest single lever): pad channels / hidden to 128 multiples.
    Cp = _round_up(C, LANE)
    Hdp = _round_up(Hd, LANE)
    assert Cp % d == 0, "padded channels must split into whole heads"
    Hp = Cp // d                    # real heads + zero-valued padding heads
    width = Hp * N                  # packed per-batch score width

    f32 = jnp.float32
    scale = float(d) ** -0.5

    def padw(a, rows, cols, pre_scale=1.0):     # (L, r0, c0) -> (L, rows, cols) bf16
        a = a.astype(f32) * pre_scale
        a = jnp.pad(a, ((0, 0), (0, rows - a.shape[1]), (0, cols - a.shape[2])))
        return a.astype(COMPUTE_DTYPE)

    def padv(a, cols):                           # (L, 1, c0) -> (L, 1, cols) f32
        return jnp.pad(a.astype(f32), ((0, 0), (0, 0), (0, cols - a.shape[2])))

    wq = padw(params["wq"], Cp, Cp, pre_scale=scale)   # fold 1/sqrt(d) into Wq (free)
    wk = padw(params["wk"], Cp, Cp)
    wv = padw(params["wv"], Cp, Cp)
    wp = padw(params["wp"], Cp, Cp)
    w1 = padw(params["w1"], Cp, Hdp)
    w2 = padw(params["w2"], Hdp, Cp)
    g1, be1 = padv(params["g1"], Cp), padv(params["be1"], Cp)
    g2, be2 = padv(params["g2"], Cp), padv(params["be2"], Cp)
    bp, b2 = padv(params["bp"], Cp), padv(params["b2"], Cp)
    b1 = padv(params["b1"], Hdp)

    # Layer-invariant head incidence (hoisted out of the kernel, fetched once):
    # head(packed score column) == head(channel).  Serves both as the K/V head mask
    # and as the softmax-denominator -> channel broadcast one-hot.
    head_of_row = jnp.arange(width) // N
    head_of_ch = jnp.arange(Cp) // d
    head_mask = (head_of_row[:, None] == head_of_ch[None, :]).astype(COMPUTE_DTYPE)

    x2 = jnp.pad(x.reshape(M, C).astype(f32), ((0, 0), (0, Cp - C)))

    def per_layer(a, b):
        return pl.BlockSpec((None, a, b), lambda l: (l, 0, 0))

    def fetch_once(a, b):
        return pl.BlockSpec((a, b), lambda l: (0, 0))

    in_specs = [
        fetch_once(M, Cp),                            # x (read only at layer 0)
        fetch_once(width, Cp),                        # head incidence constant
        per_layer(1, Cp), per_layer(1, Cp),           # norm1 gamma / beta
        per_layer(Cp, Cp), per_layer(Cp, Cp),         # Wq, Wk
        per_layer(Cp, Cp), per_layer(Cp, Cp),         # Wv, Wproj
        per_layer(1, Cp),                             # proj bias
        per_layer(1, Cp), per_layer(1, Cp),           # norm2 gamma / beta
        per_layer(Cp, Hdp), per_layer(1, Hdp),        # fc1 W / b
        per_layer(Hdp, Cp), per_layer(1, Cp),         # fc2 W / b
    ]
    out_spec = pl.BlockSpec((M, Cp), lambda l: (0, 0))   # resident across all layers

    args = (x2, head_mask,
            g1, be1, wq, wk, wv, wp, bp, g2, be2, w1, b1, w2, b2)

    flops_per_layer = (2 * M * Cp * Cp * 4            # q, k, v, proj
                       + 2 * B * N * width * Cp * 2   # packed scores + p@v (per batch)
                       + 2 * M * width * Cp           # denominator broadcast
                       + 2 * M * Cp * Hdp * 2)        # mlp
    bytes_accessed = sum(int(a.size) * a.dtype.itemsize for a in args) + M * Cp * 4

    kernel = partial(transformer_kernel, seq=N, real_c=C)
    out2 = pl.pallas_call(
        kernel,
        out_shape=jax.ShapeDtypeStruct((M, Cp), f32),
        grid_spec=pltpu.PrefetchScalarGridSpec(
            num_scalar_prefetch=0,
            grid=(L,),                  # one step per layer; weight DMA double-buffers
            in_specs=in_specs,
            out_specs=out_spec,
        ),
        compiler_params=pltpu.CompilerParams(
            dimension_semantics=("arbitrary",),      # layers are sequentially dependent
            vmem_limit_bytes=32 * 1024 * 1024,       # explicit budget (re-derive for v7x)
        ),
        cost_estimate=pl.CostEstimate(
            flops=int(L * flops_per_layer),
            transcendentals=int(L * (B * N * width + M * Cp + 2 * M)),
            bytes_accessed=int(bytes_accessed),
        ),
    )(*args)
    return out2[:, :C].reshape(B, N, C)


# ----------------------- pure-JAX (f32, PyTorch-semantics) reference -----------------------
def _ref_forward(x, params, num_heads):
    L = params["wq"].shape[0]
    B, N, C = x.shape
    d = C // num_heads
    f32 = lambda a: a.astype(jnp.float32)

    def ln(z, g, b):
        mu = z.mean(-1, keepdims=True)
        var = ((z - mu) ** 2).mean(-1, keepdims=True)
        return (z - mu) / jnp.sqrt(var + LN_EPS) * g + b

    for l in range(L):
        xn = ln(x, f32(params["g1"][l, 0]), f32(params["be1"][l, 0]))
        q = xn @ f32(params["wq"][l])
        k = xn @ f32(params["wk"][l])
        v = xn @ f32(params["wv"][l])
        qh = q.reshape(B, N, num_heads, d)
        kh = k.reshape(B, N, num_heads, d)
        vh = v.reshape(B, N, num_heads, d)
        att = jnp.einsum('bnhd,bmhd->bnmh', qh, kh) * (d ** -0.5)
        att = jax.nn.softmax(att, axis=2)
        out = jnp.einsum('bnmh,bmhd->bnhd', att, vh).reshape(B, N, C)
        out = out @ f32(params["wp"][l]) + f32(params["bp"][l, 0])
        x = x + out
        xn2 = ln(x, f32(params["g2"][l, 0]), f32(params["be2"][l, 0]))
        hid = jnp.maximum(xn2 @ f32(params["w1"][l]) + f32(params["b1"][l, 0]), 0.0)
        x = x + hid @ f32(params["w2"][l]) + f32(params["b2"][l, 0])
    return x


# ------------------------------------------------------------------------------------------
def make_params(key, num_layers, dim, hidden):
    L, C, Hd = num_layers, dim, hidden
    ks = jax.random.split(key, 13)
    s = 0.02

    def w(k, shape):   # weights stored bf16 (halves weight DMA / VMEM; f32 accumulation)
        return (s * jax.random.normal(k, shape, jnp.float32)).astype(jnp.bfloat16)

    def b(k, shape):
        return s * jax.random.normal(k, shape, jnp.float32)

    return {
        "g1":  1.0 + 0.1 * jax.random.normal(ks[0], (L, 1, C), jnp.float32),
        "be1": 0.1 * jax.random.normal(ks[1], (L, 1, C), jnp.float32),
        "wq":  w(ks[2], (L, C, C)),
        "wk":  w(ks[3], (L, C, C)),       # first C output features of PyTorch to_keys_values
        "wv":  w(ks[4], (L, C, C)),       # last  C output features of PyTorch to_keys_values
        "wp":  w(ks[5], (L, C, C)),
        "bp":  b(ks[6], (L, 1, C)),
        "g2":  1.0 + 0.1 * jax.random.normal(ks[7], (L, 1, C), jnp.float32),
        "be2": 0.1 * jax.random.normal(ks[8], (L, 1, C), jnp.float32),
        "w1":  w(ks[9], (L, C, Hd)),
        "b1":  b(ks[10], (L, 1, Hd)),
        "w2":  w(ks[11], (L, Hd, C)),
        "b2":  b(ks[12], (L, 1, C)),
    }


if __name__ == "__main__":
    # Transformer(dim_self=32, num_heads=4, num_layers=2, mlp_ratio=2.0), enc_dec=False
    B, N, C = 2, 8, 32
    num_heads, num_layers, mlp_ratio = 4, 2, 2.0
    Hd = int(C * mlp_ratio)

    root = jax.random.PRNGKey(0)
    kx, kparam = jax.random.split(root)
    x = jax.random.normal(kx, (B, N, C), jnp.float32)
    params = make_params(kparam, num_layers, C, Hd)

    fwd = jax.jit(transformer_forward, static_argnums=2)
    out = jax.block_until_ready(fwd(x, params, num_heads))

    ref = jax.block_until_ready(_ref_forward(x, params, num_heads))
    assert out.shape == (B, N, C)
    # bf16 matmul operands (f32 accumulate) vs pure-f32 reference -> small tolerance.
    assert jnp.allclose(out, ref, atol=3e-3, rtol=3e-3), "mismatch vs reference"

    print("KERNEL_OK")
</pallas_src>

<mosaic_0001>
module attributes {stable_mosaic.version = 11 : i64} {
  func.func @transformer_kernel(%arg0: i32, %arg1: memref<16x128xf32, #tpu.memory_space<vmem>>, %arg2: memref<128x128xbf16, #tpu.memory_space<vmem>>, %arg3: memref<1x1x128xf32, #tpu.memory_space<vmem>>, %arg4: memref<1x1x128xf32, #tpu.memory_space<vmem>>, %arg5: memref<1x128x128xbf16, #tpu.memory_space<vmem>>, %arg6: memref<1x128x128xbf16, #tpu.memory_space<vmem>>, %arg7: memref<1x128x128xbf16, #tpu.memory_space<vmem>>, %arg8: memref<1x128x128xbf16, #tpu.memory_space<vmem>>, %arg9: memref<1x1x128xf32, #tpu.memory_space<vmem>>, %arg10: memref<1x1x128xf32, #tpu.memory_space<vmem>>, %arg11: memref<1x1x128xf32, #tpu.memory_space<vmem>>, %arg12: memref<1x128x128xbf16, #tpu.memory_space<vmem>>, %arg13: memref<1x1x128xf32, #tpu.memory_space<vmem>>, %arg14: memref<1x128x128xbf16, #tpu.memory_space<vmem>>, %arg15: memref<1x1x128xf32, #tpu.memory_space<vmem>>, %arg16: memref<16x128xf32, #tpu.memory_space<vmem>>) attributes {dimension_semantics = [#tpu.dimension_semantics<arbitrary>], iteration_bounds = array<i64: 2>, scalar_prefetch = 0 : i64, scratch_operands = 0 : i64, tpu.core_type = #tpu.core_type<tc>, window_params = [{pipeline_mode = #tpu.pipeline_mode<synchronous>, transform_indices = @transform_0, window_bounds = array<i64: 16, 128>}, {pipeline_mode = #tpu.pipeline_mode<synchronous>, transform_indices = @transform_1, window_bounds = array<i64: 128, 128>}, {transform_indices = @transform_2, window_bounds = array<i64: 1, 1, 128>}, {transform_indices = @transform_3, window_bounds = array<i64: 1, 1, 128>}, {transform_indices = @transform_4, window_bounds = array<i64: 1, 128, 128>}, {transform_indices = @transform_5, window_bounds = array<i64: 1, 128, 128>}, {transform_indices = @transform_6, window_bounds = array<i64: 1, 128, 128>}, {transform_indices = @transform_7, window_bounds = array<i64: 1, 128, 128>}, {transform_indices = @transform_8, window_bounds = array<i64: 1, 1, 128>}, {transform_indices = @transform_9, window_bounds = array<i64: 1, 1, 128>}, {transform_indices = @transform_10, window_bounds = array<i64: 1, 1, 128>}, {transform_indices = @transform_11, window_bounds = array<i64: 1, 128, 128>}, {transform_indices = @transform_12, window_bounds = array<i64: 1, 1, 128>}, {transform_indices = @transform_13, window_bounds = array<i64: 1, 128, 128>}, {transform_indices = @transform_14, window_bounds = array<i64: 1, 1, 128>}, {pipeline_mode = #tpu.pipeline_mode<synchronous>, transform_indices = @transform_15, window_bounds = array<i64: 16, 128>}]} {
    %c0_i32 = arith.constant 0 : i32
    %0 = arith.cmpi eq, %arg0, %c0_i32 : i32
    %1 = arith.extui %0 : i1 to i32
    %c0_i32_0 = arith.constant 0 : i32
    %2 = arith.cmpi ne, %1, %c0_i32_0 : i32
    scf.if %2 {
      %c0_66 = arith.constant 0 : index
      %c0_67 = arith.constant 0 : index
      %134 = vector.load %arg1[%c0_66, %c0_67] : memref<16x128xf32, #tpu.memory_space<vmem>>, vector<16x128xf32>
      %c0_68 = arith.constant 0 : index
      %c0_69 = arith.constant 0 : index
      %135 = vector.load %arg16[%c0_68, %c0_69] : memref<16x128xf32, #tpu.memory_space<vmem>>, vector<16x128xf32>
      tpu.vector_store %arg16[%c0_68, %c0_69], %134 {strides = array<i32>} : memref<16x128xf32, #tpu.memory_space<vmem>>, vector<16x128xf32>,
    } else {
    }
    %c0 = arith.constant 0 : index
    %c0_1 = arith.constant 0 : index
    %3 = vector.load %arg16[%c0, %c0_1] : memref<16x128xf32, #tpu.memory_space<vmem>>, vector<16x128xf32>
    %c0_2 = arith.constant 0 : index
    %c0_3 = arith.constant 0 : index
    %4 = vector.load %arg2[%c0_2, %c0_3] : memref<128x128xbf16, #tpu.memory_space<vmem>>, vector<128x128xbf16>
    %c0_4 = arith.constant 0 : index
    %c0_5 = arith.constant 0 : index
    %c0_6 = arith.constant 0 : index
    %5 = vector.load %arg3[%c0_4, %c0_5, %c0_6] : memref<1x1x128xf32, #tpu.memory_space<vmem>>, vector<1x1x128xf32>
    %6 = vector.shape_cast %5 : vector<1x1x128xf32> to vector<1x128xf32>
    %c0_7 = arith.constant 0 : index
    %c0_8 = arith.constant 0 : index
    %c0_9 = arith.constant 0 : index
    %7 = vector.load %arg4[%c0_7, %c0_8, %c0_9] : memref<1x1x128xf32, #tpu.memory_space<vmem>>, vector<1x1x128xf32>
    %8 = vector.shape_cast %7 : vector<1x1x128xf32> to vector<1x128xf32>
    %cst = arith.constant dense<0.000000e+00> : vector<16xf32>
    %9 = vector.multi_reduction <add>, %3, %cst [1] : vector<16x128xf32> to vector<16xf32>
    %10 = vector.shape_cast %9 : vector<16xf32> to vector<16x1xf32>
    %cst_10 = arith.constant 3.125000e-02 : f32
    %11 = vector.broadcast %cst_10 : f32 to vector<16x1xf32>
    %12 = arith.mulf %10, %11 : vector<16x1xf32>
    %13 = arith.mulf %3, %3 : vector<16x128xf32>
    %cst_11 = arith.constant dense<0.000000e+00> : vector<16xf32>
    %14 = vector.multi_reduction <add>, %13, %cst_11 [1] : vector<16x128xf32> to vector<16xf32>
    %15 = vector.shape_cast %14 : vector<16xf32> to vector<16x1xf32>
    %cst_12 = arith.constant 3.125000e-02 : f32
    %16 = vector.broadcast %cst_12 : f32 to vector<16x1xf32>
    %17 = arith.mulf %15, %16 : vector<16x1xf32>
    %18 = arith.mulf %12, %12 : vector<16x1xf32>
    %19 = arith.subf %17, %18 : vector<16x1xf32>
    %20 = vector.broadcast %12 : vector<16x1xf32> to vector<16x128xf32>
    %21 = arith.subf %3, %20 : vector<16x128xf32>
    %cst_13 = arith.constant 9.99999974E-6 : f32
    %22 = vector.broadcast %cst_13 : f32 to vector<16x1xf32>
    %23 = arith.addf %19, %22 : vector<16x1xf32>
    %24 = math.rsqrt %23 : vector<16x1xf32>
    %25 = vector.broadcast %24 : vector<16x1xf32> to vector<16x128xf32>
    %26 = arith.mulf %21, %25 : vector<16x128xf32>
    %27 = vector.broadcast %6 : vector<1x128xf32> to vector<16x128xf32>
    %28 = arith.mulf %26, %27 : vector<16x128xf32>
    %29 = vector.broadcast %8 : vector<1x128xf32> to vector<16x128xf32>
    %30 = arith.addf %28, %29 : vector<16x128xf32>
    %c0_14 = arith.constant 0 : index
    %c0_15 = arith.constant 0 : index
    %c0_16 = arith.constant 0 : index
    %31 = vector.load %arg5[%c0_14, %c0_15, %c0_16] : memref<1x128x128xbf16, #tpu.memory_space<vmem>>, vector<1x128x128xbf16>
    %32 = vector.shape_cast %31 : vector<1x128x128xbf16> to vector<128x128xbf16>
    %33 = arith.truncf %30 : vector<16x128xf32> to vector<16x128xbf16>
    %cst_17 = arith.constant dense<0.000000e+00> : vector<16x128xf32>
    %34 = tpu.matmul %33, %32, %cst_17 {dimension_numbers = #tpu.dot_dimension_numbers<[1], [0], [0], [1], [0, 0, 1, 1], [], []>} : vector<16x128xbf16>, vector<128x128xbf16>, vector<16x128xf32> -> vector<16x128xf32>
    %c0_18 = arith.constant 0 : index
    %c0_19 = arith.constant 0 : index
    %c0_20 = arith.constant 0 : index
    %35 = vector.load %arg6[%c0_18, %c0_19, %c0_20] : memref<1x128x128xbf16, #tpu.memory_space<vmem>>, vector<1x128x128xbf16>
    %36 = vector.shape_cast %35 : vector<1x128x128xbf16> to vector<128x128xbf16>
    %37 = arith.truncf %30 : vector<16x128xf32> to vector<16x128xbf16>
    %cst_21 = arith.constant dense<0.000000e+00> : vector<16x128xf32>
    %38 = tpu.matmul %37, %36, %cst_21 {dimension_numbers = #tpu.dot_dimension_numbers<[1], [0], [0], [1], [0, 0, 1, 1], [], []>} : vector<16x128xbf16>, vector<128x128xbf16>, vector<16x128xf32> -> vector<16x128xf32>
    %c0_22 = arith.constant 0 : index
    %c0_23 = arith.constant 0 : index
    %c0_24 = arith.constant 0 : index
    %39 = vector.load %arg7[%c0_22, %c0_23, %c0_24] : memref<1x128x128xbf16, #tpu.memory_space<vmem>>, vector<1x128x128xbf16>
    %40 = vector.shape_cast %39 : vector<1x128x128xbf16> to vector<128x128xbf16>
    %41 = arith.truncf %30 : vector<16x128xf32> to vector<16x128xbf16>
    %cst_25 = arith.constant dense<0.000000e+00> : vector<16x128xf32>
    %42 = tpu.matmul %41, %40, %cst_25 {dimension_numbers = #tpu.dot_dimension_numbers<[1], [0], [0], [1], [0, 0, 1, 1], [], []>} : vector<16x128xbf16>, vector<128x128xbf16>, vector<16x128xf32> -> vector<16x128xf32>
    %43 = vector.shape_cast %34 : vector<16x128xf32> to vector<2x8x128xf32>
    %44 = arith.truncf %43 : vector<2x8x128xf32> to vector<2x8x128xbf16>
    %45 = vector.shape_cast %38 : vector<16x128xf32> to vector<2x8x128xf32>
    %46 = vector.shape_cast %42 : vector<16x128xf32> to vector<2x8x128xf32>
    %47 = vector.shape_cast %45 : vector<2x8x128xf32> to vector<2x1x8x128xf32>
    %48 = vector.shape_cast %47 : vector<2x1x8x128xf32> to vector<2x1x8x128xf32>
    %49 = vector.broadcast %48 : vector<2x1x8x128xf32> to vector<2x16x8x128xf32>
    %50 = vector.shape_cast %49 : vector<2x16x8x128xf32> to vector<2x128x128xf32>
    %51 = arith.truncf %50 : vector<2x128x128xf32> to vector<2x128x128xbf16>
    %52 = vector.shape_cast %4 : vector<128x128xbf16> to vector<1x128x128xbf16>
    %53 = vector.broadcast %52 : vector<1x128x128xbf16> to vector<2x128x128xbf16>
    %54 = arith.mulf %51, %53 : vector<2x128x128xbf16>
    %55 = vector.shape_cast %46 : vector<2x8x128xf32> to vector<2x1x8x128xf32>
    %56 = vector.shape_cast %55 : vector<2x1x8x128xf32> to vector<2x1x8x128xf32>
    %57 = vector.broadcast %56 : vector<2x1x8x128xf32> to vector<2x16x8x128xf32>
    %58 = vector.shape_cast %57 : vector<2x16x8x128xf32> to vector<2x128x128xf32>
    %59 = arith.truncf %58 : vector<2x128x128xf32> to vector<2x128x128xbf16>
    %60 = vector.shape_cast %4 : vector<128x128xbf16> to vector<1x128x128xbf16>
    %61 = vector.broadcast %60 : vector<1x128x128xbf16> to vector<2x128x128xbf16>
    %62 = arith.mulf %59, %61 : vector<2x128x128xbf16>
    "tpu.trace_start"() <{level = 10 : i32, message = "bqc,bkc->bqk"}> : () -> ()
    %cst_26 = arith.constant dense<0.000000e+00> : vector<2x8x128xf32>
    %63 = tpu.matmul %44, %54, %cst_26 {dimension_numbers = #tpu.dot_dimension_numbers<[2], [2], [1], [1], [0, 0, 0, 1, 1, 1], [0], [0]>} : vector<2x8x128xbf16>, vector<2x128x128xbf16>, vector<2x8x128xf32> -> vector<2x8x128xf32>
    "tpu.trace_stop"() : () -> ()
    %cst_27 = arith.constant dense<0xFF800000> : vector<2x8xf32>
    %64 = vector.multi_reduction <maximumf>, %63, %cst_27 [2] : vector<2x8x128xf32> to vector<2x8xf32>
    %65 = vector.shape_cast %64 : vector<2x8xf32> to vector<2x8x1xf32>
    %66 = vector.broadcast %65 : vector<2x8x1xf32> to vector<2x8x128xf32>
    %67 = arith.subf %63, %66 : vector<2x8x128xf32>
    %68 = math.exp %67 : vector<2x8x128xf32>
    %69 = arith.truncf %68 : vector<2x8x128xf32> to vector<2x8x128xbf16>
    %70 = vector.shape_cast %68 : vector<2x8x128xf32> to vector<16x128xf32>
    %71 = arith.truncf %70 : vector<16x128xf32> to vector<16x128xbf16>
    "tpu.trace_start"() <{level = 10 : i32, message = "bqk,bkc->bqc"}> : () -> ()
    %cst_28 = arith.constant dense<0.000000e+00> : vector<2x8x128xf32>
    %72 = tpu.matmul %69, %62, %cst_28 {dimension_numbers = #tpu.dot_dimension_numbers<[2], [1], [1], [2], [0, 0, 0, 1, 1, 2], [0], [0]>} : vector<2x8x128xbf16>, vector<2x128x128xbf16>, vector<2x8x128xf32> -> vector<2x8x128xf32>
    "tpu.trace_stop"() : () -> ()
    %cst_29 = arith.constant dense<0.000000e+00> : vector<16x128xf32>
    %73 = tpu.matmul %71, %4, %cst_29 {dimension_numbers = #tpu.dot_dimension_numbers<[1], [0], [0], [1], [0, 0, 1, 1], [], []>} : vector<16x128xbf16>, vector<128x128xbf16>, vector<16x128xf32> -> vector<16x128xf32>
    %cst_30 = arith.constant 1.000000e-30 : f32
    %74 = vector.broadcast %cst_30 : f32 to vector<16x128xf32>
    %75 = arith.maximumf %73, %74 : vector<16x128xf32>
    %76 = vector.shape_cast %72 : vector<2x8x128xf32> to vector<16x128xf32>
    %77 = tpu.reciprocal %75 : vector<16x128xf32> -> vector<16x128xf32>
    %78 = arith.mulf %76, %77 : vector<16x128xf32>
    %c0_31 = arith.constant 0 : index
    %c0_32 = arith.constant 0 : index
    %c0_33 = arith.constant 0 : index
    %79 = vector.load %arg8[%c0_31, %c0_32, %c0_33] : memref<1x128x128xbf16, #tpu.memory_space<vmem>>, vector<1x128x128xbf16>
    %80 = vector.shape_cast %79 : vector<1x128x128xbf16> to vector<128x128xbf16>
    %81 = arith.truncf %78 : vector<16x128xf32> to vector<16x128xbf16>
    %cst_34 = arith.constant dense<0.000000e+00> : vector<16x128xf32>
    %82 = tpu.matmul %81, %80, %cst_34 {dimension_numbers = #tpu.dot_dimension_numbers<[1], [0], [0], [1], [0, 0, 1, 1], [], []>} : vector<16x128xbf16>, vector<128x128xbf16>, vector<16x128xf32> -> vector<16x128xf32>
    %c0_35 = arith.constant 0 : index
    %c0_36 = arith.constant 0 : index
    %c0_37 = arith.constant 0 : index
    %83 = vector.load %arg9[%c0_35, %c0_36, %c0_37] : memref<1x1x128xf32, #tpu.memory_space<vmem>>, vector<1x1x128xf32>
    %84 = vector.shape_cast %83 : vector<1x1x128xf32> to vector<1x128xf32>
    %85 = vector.broadcast %84 : vector<1x128xf32> to vector<16x128xf32>
    %86 = arith.addf %82, %85 : vector<16x128xf32>
    %87 = arith.addf %3, %86 : vector<16x128xf32>
    %c0_38 = arith.constant 0 : index
    %c0_39 = arith.constant 0 : index
    %c0_40 = arith.constant 0 : index
    %88 = vector.load %arg10[%c0_38, %c0_39, %c0_40] : memref<1x1x128xf32, #tpu.memory_space<vmem>>, vector<1x1x128xf32>
    %89 = vector.shape_cast %88 : vector<1x1x128xf32> to vector<1x128xf32>
    %c0_41 = arith.constant 0 : index
    %c0_42 = arith.constant 0 : index
    %c0_43 = arith.constant 0 : index
    %90 = vector.load %arg11[%c0_41, %c0_42, %c0_43] : memref<1x1x128xf32, #tpu.memory_space<vmem>>, vector<1x1x128xf32>
    %91 = vector.shape_cast %90 : vector<1x1x128xf32> to vector<1x128xf32>
    %cst_44 = arith.constant dense<0.000000e+00> : vector<16xf32>
    %92 = vector.multi_reduction <add>, %87, %cst_44 [1] : vector<16x128xf32> to vector<16xf32>
    %93 = vector.shape_cast %92 : vector<16xf32> to vector<16x1xf32>
    %cst_45 = arith.constant 3.125000e-02 : f32
    %94 = vector.broadcast %cst_45 : f32 to vector<16x1xf32>
    %95 = arith.mulf %93, %94 : vector<16x1xf32>
    %96 = arith.mulf %87, %87 : vector<16x128xf32>
    %cst_46 = arith.constant dense<0.000000e+00> : vector<16xf32>
    %97 = vector.multi_reduction <add>, %96, %cst_46 [1] : vector<16x128xf32> to vector<16xf32>
    %98 = vector.shape_cast %97 : vector<16xf32> to vector<16x1xf32>
    %cst_47 = arith.constant 3.125000e-02 : f32
    %99 = vector.broadcast %cst_47 : f32 to vector<16x1xf32>
    %100 = arith.mulf %98, %99 : vector<16x1xf32>
    %101 = arith.mulf %95, %95 : vector<16x1xf32>
    %102 = arith.subf %100, %101 : vector<16x1xf32>
    %103 = vector.broadcast %95 : vector<16x1xf32> to vector<16x128xf32>
    %104 = arith.subf %87, %103 : vector<16x128xf32>
    %cst_48 = arith.constant 9.99999974E-6 : f32
    %105 = vector.broadcast %cst_48 : f32 to vector<16x1xf32>
    %106 = arith.addf %102, %105 : vector<16x1xf32>
    %107 = math.rsqrt %106 : vector<16x1xf32>
    %108 = vector.broadcast %107 : vector<16x1xf32> to vector<16x128xf32>
    %109 = arith.mulf %104, %108 : vector<16x128xf32>
    %110 = vector.broadcast %89 : vector<1x128xf32> to vector<16x128xf32>
    %111 = arith.mulf %109, %110 : vector<16x128xf32>
    %112 = vector.broadcast %91 : vector<1x128xf32> to vector<16x128xf32>
    %113 = arith.addf %111, %112 : vector<16x128xf32>
    %c0_49 = arith.constant 0 : index
    %c0_50 = arith.constant 0 : index
    %c0_51 = arith.constant 0 : index
    %114 = vector.load %arg12[%c0_49, %c0_50, %c0_51] : memref<1x128x128xbf16, #tpu.memory_space<vmem>>, vector<1x128x128xbf16>
    %115 = vector.shape_cast %114 : vector<1x128x128xbf16> to vector<128x128xbf16>
    %116 = arith.truncf %113 : vector<16x128xf32> to vector<16x128xbf16>
    %cst_52 = arith.constant dense<0.000000e+00> : vector<16x128xf32>
    %117 = tpu.matmul %116, %115, %cst_52 {dimension_numbers = #tpu.dot_dimension_numbers<[1], [0], [0], [1], [0, 0, 1, 1], [], []>} : vector<16x128xbf16>, vector<128x128xbf16>, vector<16x128xf32> -> vector<16x128xf32>
    %c0_53 = arith.constant 0 : index
    %c0_54 = arith.constant 0 : index
    %c0_55 = arith.constant 0 : index
    %118 = vector.load %arg13[%c0_53, %c0_54, %c0_55] : memref<1x1x128xf32, #tpu.memory_space<vmem>>, vector<1x1x128xf32>
    %119 = vector.shape_cast %118 : vector<1x1x128xf32> to vector<1x128xf32>
    %120 = vector.broadcast %119 : vector<1x128xf32> to vector<16x128xf32>
    %121 = arith.addf %117, %120 : vector<16x128xf32>
    %cst_56 = arith.constant 0.000000e+00 : f32
    %122 = vector.broadcast %cst_56 : f32 to vector<16x128xf32>
    %123 = arith.maximumf %121, %122 : vector<16x128xf32>
    %c0_57 = arith.constant 0 : index
    %c0_58 = arith.constant 0 : index
    %c0_59 = arith.constant 0 : index
    %124 = vector.load %arg14[%c0_57, %c0_58, %c0_59] : memref<1x128x128xbf16, #tpu.memory_space<vmem>>, vector<1x128x128xbf16>
    %125 = vector.shape_cast %124 : vector<1x128x128xbf16> to vector<128x128xbf16>
    %126 = arith.truncf %123 : vector<16x128xf32> to vector<16x128xbf16>
    %cst_60 = arith.constant dense<0.000000e+00> : vector<16x128xf32>
    %127 = tpu.matmul %126, %125, %cst_60 {dimension_numbers = #tpu.dot_dimension_numbers<[1], [0], [0], [1], [0, 0, 1, 1], [], []>} : vector<16x128xbf16>, vector<128x128xbf16>, vector<16x128xf32> -> vector<16x128xf32>
    %c0_61 = arith.constant 0 : index
    %c0_62 = arith.constant 0 : index
    %c0_63 = arith.constant 0 : index
    %128 = vector.load %arg15[%c0_61, %c0_62, %c0_63] : memref<1x1x128xf32, #tpu.memory_space<vmem>>, vector<1x1x128xf32>
    %129 = vector.shape_cast %128 : vector<1x1x128xf32> to vector<1x128xf32>
    %130 = vector.broadcast %129 : vector<1x128xf32> to vector<16x128xf32>
    %131 = arith.addf %127, %130 : vector<16x128xf32>
    %132 = arith.addf %87, %131 : vector<16x128xf32>
    %c0_64 = arith.constant 0 : index
    %c0_65 = arith.constant 0 : index
    %133 = vector.load %arg16[%c0_64, %c0_65] : memref<16x128xf32, #tpu.memory_space<vmem>>, vector<16x128xf32>
    tpu.vector_store %arg16[%c0_64, %c0_65], %132 {strides = array<i32>} : memref<16x128xf32, #tpu.memory_space<vmem>>, vector<16x128xf32>,
    return
  }
  func.func @transform_0(%arg0: i32) -> (i32, i32) {
    %c0_i32 = arith.constant 0 : i32
    %c0_i32_0 = arith.constant 0 : i32
    %c0_i32_1 = arith.constant 0 : i32
    return %c0_i32, %c0_i32_0 : i32, i32
  }
  func.func @transform_1(%arg0: i32) -> (i32, i32) {
    %c0_i32 = arith.constant 0 : i32
    %c0_i32_0 = arith.constant 0 : i32
    %c0_i32_1 = arith.constant 0 : i32
    return %c0_i32, %c0_i32_0 : i32, i32
  }
  func.func @transform_2(%arg0: i32) -> (i32, i32, i32) {
    %c0_i32 = arith.constant 0 : i32
    %c0_i32_0 = arith.constant 0 : i32
    %c0_i32_1 = arith.constant 0 : i32
    return %arg0, %c0_i32, %c0_i32_0 : i32, i32, i32
  }
  func.func @transform_3(%arg0: i32) -> (i32, i32, i32) {
    %c0_i32 = arith.constant 0 : i32
    %c0_i32_0 = arith.constant 0 : i32
    %c0_i32_1 = arith.constant 0 : i32
    return %arg0, %c0_i32, %c0_i32_0 : i32, i32, i32
  }
  func.func @transform_4(%arg0: i32) -> (i32, i32, i32) {
    %c0_i32 = arith.constant 0 : i32
    %c0_i32_0 = arith.constant 0 : i32
    %c0_i32_1 = arith.constant 0 : i32
    return %arg0, %c0_i32, %c0_i32_0 : i32, i32, i32
  }
  func.func @transform_5(%arg0: i32) -> (i32, i32, i32) {
    %c0_i32 = arith.constant 0 : i32
    %c0_i32_0 = arith.constant 0 : i32
    %c0_i32_1 = arith.constant 0 : i32
    return %arg0, %c0_i32, %c0_i32_0 : i32, i32, i32
  }
  func.func @transform_6(%arg0: i32) -> (i32, i32, i32) {
    %c0_i32 = arith.constant 0 : i32
    %c0_i32_0 = arith.constant 0 : i32
    %c0_i32_1 = arith.constant 0 : i32
    return %arg0, %c0_i32, %c0_i32_0 : i32, i32, i32
  }
  func.func @transform_7(%arg0: i32) -> (i32, i32, i32) {
    %c0_i32 = arith.constant 0 : i32
    %c0_i32_0 = arith.constant 0 : i32
    %c0_i32_1 = arith.constant 0 : i32
    return %arg0, %c0_i32, %c0_i32_0 : i32, i32, i32
  }
  func.func @transform_8(%arg0: i32) -> (i32, i32, i32) {
    %c0_i32 = arith.constant 0 : i32
    %c0_i32_0 = arith.constant 0 : i32
    %c0_i32_1 = arith.constant 0 : i32
    return %arg0, %c0_i32, %c0_i32_0 : i32, i32, i32
  }
  func.func @transform_9(%arg0: i32) -> (i32, i32, i32) {
    %c0_i32 = arith.constant 0 : i32
    %c0_i32_0 = arith.constant 0 : i32
    %c0_i32_1 = arith.constant 0 : i32
    return %arg0, %c0_i32, %c0_i32_0 : i32, i32, i32
  }
  func.func @transform_10(%arg0: i32) -> (i32, i32, i32) {
    %c0_i32 = arith.constant 0 : i32
    %c0_i32_0 = arith.constant 0 : i32
    %c0_i32_1 = arith.constant 0 : i32
    return %arg0, %c0_i32, %c0_i32_0 : i32, i32, i32
  }
  func.func @transform_11(%arg0: i32) -> (i32, i32, i32) {
    %c0_i32 = arith.constant 0 : i32
    %c0_i32_0 = arith.constant 0 : i32
    %c0_i32_1 = arith.constant 0 : i32
    return %arg0, %c0_i32, %c0_i32_0 : i32, i32, i32
  }
  func.func @transform_12(%arg0: i32) -> (i32, i32, i32) {
    %c0_i32 = arith.constant 0 : i32
    %c0_i32_0 = arith.constant 0 : i32
    %c0_i32_1 = arith.constant 0 : i32
    return %arg0, %c0_i32, %c0_i32_0 : i32, i32, i32
  }
  func.func @transform_13(%arg0: i32) -> (i32, i32, i32) {
    %c0_i32 = arith.constant 0 : i32
    %c0_i32_0 = arith.constant 0 : i32
    %c0_i32_1 = arith.constant 0 : i32
    return %arg0, %c0_i32, %c0_i32_0 : i32, i32, i32
  }
  func.func @transform_14(%arg0: i32) -> (i32, i32, i32) {
    %c0_i32 = arith.constant 0 : i32
    %c0_i32_0 = arith.constant 0 : i32
    %c0_i32_1 = arith.constant 0 : i32
    return %arg0, %c0_i32, %c0_i32_0 : i32, i32, i32
  }
  func.func @transform_15(%arg0: i32) -> (i32, i32) {
    %c0_i32 = arith.constant 0 : i32
    %c0_i32_0 = arith.constant 0 : i32
    %c0_i32_1 = arith.constant 0 : i32
    return %c0_i32, %c0_i32_0 : i32, i32
  }
}

</mosaic_0001>

<bundles_post_ra>
// kernel: transformer_forward.1
= control target key start
LH: loop header
LB: loop body
LE: loop exit
PB: predicated region body
PF: predicated region fallthrough
CT: control target
= control target key end

     0   :  { %s2388_s18 = smov 0   ;;  %s2831_s0 = inlined_call_operand.vmem [shape: f32[16,128], index: 0, kind: input, shape index: {}]   ;;  %s2832_s1 = inlined_call_operand.vmem [shape: bf16[128,128], index: 1, kind: input, shape index: {}]   ;;  %s2833_s2 = inlined_call_operand.vmem [shape: f32[2,1,128], index: 2, kind: input, shape index: {}]   ;;  %s2834_s3 = inlined_call_operand.vmem [shape: f32[2,1,128], index: 3, kind: input, shape index: {}]   ;;  %s2835_s4 = inlined_call_operand.vmem [shape: bf16[2,128,128], index: 4, kind: input, shape index: {}]   ;;  %s2836_s5 = inlined_call_operand.vmem [shape: bf16[2,128,128], index: 5, kind: input, shape index: {}]   ;;  %s2837_s6 = inlined_call_operand.vmem [shape: bf16[2,128,128], index: 6, kind: input, shape index: {}]   ;;  %s2838_s7 = inlined_call_operand.vmem [shape: bf16[2,128,128], index: 7, kind: input, shape index: {}]   ;;  %s2839_s8 = inlined_call_operand.vmem [shape: f32[2,1,128], index: 8, kind: input, shape index: {}]   ;;  %s2840_s9 = inlined_call_operand.vmem [shape: f32[2,1,128], index: 9, kind: input, shape index: {}]   ;;  %s2841_s10 = inlined_call_operand.vmem [shape: f32[2,1,128], index: 10, kind: input, shape index: {}]   ;;  %s2842_s11 = inlined_call_operand.vmem [shape: bf16[2,128,128], index: 11, kind: input, shape index: {}]   ;;  %s2843_s12 = inlined_call_operand.vmem [shape: f32[2,1,128], index: 12, kind: input, shape index: {}]   ;;  %s2844_s13 = inlined_call_operand.vmem [shape: bf16[2,128,128], index: 13, kind: input, shape index: {}]   ;;  %s2845_s14 = inlined_call_operand.vmem [shape: f32[2,1,128], index: 14, kind: input, shape index: {}]   ;;  %s2846_s15 = inlined_call_operand.vmem [shape: f32[16,128], index: 15, kind: output, shape index: {}]  }
   0x1   :  { %2849 = sst [smem:[#allocation3_spill]] %s2832_s1 }
   0x2   :  { %2850 = sst [smem:[#allocation4_spill]] %s2833_s2 }
   0x3   :  { %2851 = sst [smem:[#allocation5_spill]] %s2835_s4 }
   0x4   :  { %2852 = sst [smem:[#allocation6_spill]] %s2836_s5 }
   0x5   :  { %2853 = sst [smem:[#allocation7_spill]] %s2837_s6 }
   0x6   :  { %2854 = sst [smem:[#allocation8_spill]] %s2838_s7 }
   0x7   :  { %2855 = sst [smem:[#allocation9_spill]] %s2839_s8 }
   0x8 LB: > { %2856 = sst [smem:[#allocation2_spill]] %s2306_s18  ;;  %s1964_s19 = sadd.s32 4294967295, %s2306_s18   ;;  %s2306_s18 = sphi %s2388_s18, %s25_s18  }
   0x9   : > { %p1967_p0 = scmp.ge.s32.totalorder %s2306_s18, 1  ;;  %p538_p1 = scmp.lt.s32.totalorder %s2306_s18, 3 }
   0xb   : > { %p539_p2 = pnand %p1967_p0, %p538_p1 }
   0xc   : > { %p627_p3 = scmp.lt.s32.totalorder (!%p539_p2), %s1964_s19, 1  ;;  %s2859_s4 = sld [smem:[#allocation5_spill]] (!%p539_p2) }
   0xd   : > { %542 = sbr.rel (%p539_p2) target bundleno = 1414 (0x586), region = 80  ;;  %s2860_s5 = sld [smem:[#allocation6_spill]] (!%p539_p2) }
   0xe   : > { %s2861_s6 = sld [smem:[#allocation7_spill]] (!%p539_p2)  ;;  %p1980_p4 = scmp.ne.s32.totalorder (!%p539_p2), %s1964_s19, 0 }
   0xf   : > { %s2862_s7 = sld [smem:[#allocation8_spill]] (!%p539_p2) }
  0x12   : > { %s2396_s20 = scalar_select %p627_p3, %s1964_s19, 1 }
  0x14   : > { %s2207_s27 = sshll.u32 %s2396_s20, 6  ;;  %s661_s18 = scalar_lea.vmem %s2841_s10, %s2396_s20 }
  0x15   : > { %s2414_s21 = scalar_lea.vmem %s2859_s4, %s2207_s27  ;;  %s2419_s1 = scalar_lea.vmem %s2860_s5, %s2207_s27 }
  0x16   : > { %s2424_s24 = scalar_lea.vmem %s2861_s6, %s2207_s27  ;;  %s2429_s28 = scalar_lea.vmem %s2862_s7, %s2207_s27 }
  0x17   : > { %s2442_s8 = scalar_lea.vmem %s2842_s11, %s2207_s27  ;;  %s669_s6 = scalar_lea.vmem %s2843_s12, %s2396_s20 }
  0x18   : > { %s2451_s7 = scalar_lea.vmem %s2844_s13, %s2207_s27  ;;  %s677_s16 = scalar_lea.vmem %s2845_s14, %s2396_s20 }
  0x19   : > { %681 = sbr.rel (%p1980_p4) target bundleno = 33 (0x21), region = 84 }
  0x1e   : > { %v682_v0 = vld [vmem:[%s2831_s0] sm:$0xff]  ;;  %v683_v1 = vld [vmem:[%s2831_s0 + $0x8] sm:$0xff] }
  0x1f   : > { %684 = vst [vmem:[%s2846_s15] sm:$0xff] %v682_v0 }
  0x20   : > { %685 = vst [vmem:[%s2846_s15 + $0x8] sm:$0xff] %v683_v1 }
  0x21 PF: > { %v2228_v6 = vld [vmem:[%s2414_s21 + $0x38] sm:$0xff]  ;;  %v2227_v9 = vld [vmem:[%s2414_s21 + $0x30] sm:$0xff]  ;;  %v2226_v12 = vld [vmem:[%s2414_s21 + $0x28] sm:$0xff]  ;;  %s2865_s22 = scalar_lea.vmem %s2834_s3, %s2396_s20  ;;  %s2866_s27 = sld [smem:[#allocation3_spill]] }
  0x22   : > { %v2236_v7 = vld [vmem:[%s2419_s1 + $0x38] sm:$0xff]  ;;  %825 = vmatpush.bf16.msra.mxu0 %v2228_v6  ;;  %v2235_v10 = vld [vmem:[%s2419_s1 + $0x30] sm:$0xff]  ;;  %v2234_v13 = vld [vmem:[%s2419_s1 + $0x28] sm:$0xff]  ;;  %s2867_s30 = sld [smem:[#allocation9_spill]] }
  0x23   : > { %v2244_v8 = vld [vmem:[%s2424_s24 + $0x38] sm:$0xff]  ;;  %903 = vmatpush.bf16.msra.mxu1 %v2236_v7  ;;  %v2243_v11 = vld [vmem:[%s2424_s24 + $0x30] sm:$0xff]  ;;  %v2242_v14 = vld [vmem:[%s2424_s24 + $0x28] sm:$0xff] }
  0x24   : > { %981 = vmatpush.bf16.msra.mxu2 %v2244_v8  ;;  %v2225_v15 = vld [vmem:[%s2414_s21 + $0x20] sm:$0xff]  ;;  %v2224_v18 = vld [vmem:[%s2414_s21 + $0x18] sm:$0xff]  ;;  %v2223_v21 = vld [vmem:[%s2414_s21 + $0x10] sm:$0xff] }
  0x25   : > { %v2233_v16 = vld [vmem:[%s2419_s1 + $0x20] sm:$0xff]  ;;  %v2232_v19 = vld [vmem:[%s2419_s1 + $0x18] sm:$0xff]  ;;  %v2231_v22 = vld [vmem:[%s2419_s1 + $0x10] sm:$0xff] }
  0x26   : > { %v2472_v2 = vld [vmem:[%s2846_s15] sm:$0xff]  ;;  %826 = vmatpush.bf16.msra.mxu0 %v2227_v9  ;;  %v2240_v20 = vld [vmem:[%s2424_s24 + $0x18] sm:$0xff]  ;;  %v2239_v23 = vld [vmem:[%s2424_s24 + $0x10] sm:$0xff] }
  0x27   : > { %706 = vadd.xlane.f32.xlu0 %v2472_v2  ;;  %v712_v3 = vmul.f32 %v2472_v2, %v2472_v2  ;;  %v2480_v4 = vld [vmem:[%s2846_s15 + $0x8] sm:$0xff]  ;;  %904 = vmatpush.bf16.msra.mxu1 %v2235_v10  ;;  %v2241_v17 = vld [vmem:[%s2424_s24 + $0x20] sm:$0xff]  ;;  %v702_v7 = vld [vmem:[%s2866_s27 + $0x38] sm:$0xff]  }
  0x28   : > { %v713_v5 = vmul.f32 %v2480_v4, %v2480_v4  ;;  %982 = vmatpush.bf16.msra.mxu2 %v2243_v11  ;;  %v2222_v27 = vld [vmem:[%s2414_s21 + $0x8] sm:$0xff]  ;;  %v2221_v32 = vld [vmem:[%s2414_s21] sm:$0xff]  ;;  %v700_v8 = vld [vmem:[%s2866_s27 + $0x30] sm:$0xff]   ;;  %s2868_s29 = scalar_lea.vmem %s2867_s30, %s2396_s20 }
  0x29   : > { %714 = vadd.xlane.f32.xlu1 %v712_v3  ;;  %v2230_v28 = vld [vmem:[%s2419_s1 + $0x8] sm:$0xff]  ;;  %v2229_v33 = vld [vmem:[%s2419_s1] sm:$0xff] }
  0x2a   : > { %827 = vmatpush.bf16.msra.mxu0 %v2226_v12  ;;  %v2238_v29 = vld [vmem:[%s2424_s24 + $0x8] sm:$0xff]  ;;  %v2237_v35 = vld [vmem:[%s2424_s24] sm:$0xff]  ;;  %s2863_s24 = sld [smem:[#allocation4_spill]]  ;;  %v2533_v12 = vunpack.c.l.bf16 %v702_v7 }
  0x2b   : > { %905 = vmatpush.bf16.msra.mxu1 %v2234_v13  ;;  %v2278_v0 = vld [vmem:[%s2865_s22] ss:$0 sm:$0xff]  ;;  %v698_v9 = vld [vmem:[%s2866_s27 + $0x28] sm:$0xff]   ;;  %v694_v13 = vld [vmem:[%s2866_s27 + $0x18] sm:$0xff]  }
  0x2c   : > { %983 = vmatpush.bf16.msra.mxu2 %v2242_v14  ;;  %v696_v10 = vld [vmem:[%s2866_s27 + $0x20] sm:$0xff]  }
  0x2e   : > { %828 = vmatpush.bf16.msra.mxu0 %v2225_v15  ;;  %v2538_v15 = vunpack.c.h.bf16 %v702_v7 }
  0x2f   : > { %708 = vadd.xlane.f32.xlu0 %v2480_v4  ;;  %906 = vmatpush.bf16.msra.mxu1 %v2233_v16  ;;  %v2540_v16 = vunpack.c.l.bf16 %v700_v8 }
  0x30   : > { %984 = vmatpush.bf16.msra.mxu2 %v2241_v17  ;;  %s2864_s4 = scalar_lea.vmem %s2863_s24, %s2396_s20  ;;  %v2542_v17 = vunpack.c.h.bf16 %v700_v8  ;;  %s2869_s24 = scalar_lea.vmem %s2840_s9, %s2396_s20 }
  0x31   : > { %716 = vadd.xlane.f32.xlu1 %v713_v5  ;;  %v2277_v58 = vld [vmem:[%s2864_s4] ss:$0 sm:$0xff] }
  0x32   : > { %829 = vmatpush.bf16.msra.mxu0 %v2224_v18  ;;  %v692_v18 = vld [vmem:[%s2866_s27 + $0x10] sm:$0xff]  }
  0x33   : > { %907 = vmatpush.bf16.msra.mxu1 %v2232_v19  ;;  %v690_v19 = vld [vmem:[%s2866_s27 + $0x8] sm:$0xff]  }
  0x34   : > { %985 = vmatpush.bf16.msra.mxu2 %v2240_v20  ;;  %v2550_v20 = vunpack.c.l.bf16 %v698_v9 }
  0x36   : > { %830 = vmatpush.bf16.msra.mxu0 %v2223_v21  ;;  %v2552_v21 = vunpack.c.h.bf16 %v698_v9 }
  0x37   : > { %908 = vmatpush.bf16.msra.mxu1 %v2231_v22  ;;  %v2554_v22 = vunpack.c.l.bf16 %v696_v10 }
  0x38   : > { %986 = vmatpush.bf16.msra.mxu2 %v2239_v23  ;;  %v2556_v23 = vunpack.c.h.bf16 %v696_v10 }
  0x3a   : > { %831 = vmatpush.bf16.msra.mxu0 %v2222_v27  ;;  %v2564_v27 = vunpack.c.l.bf16 %v692_v18 }
  0x3b   : > { %909 = vmatpush.bf16.msra.mxu1 %v2230_v28  ;;  %v2566_v28 = vunpack.c.h.bf16 %v692_v18 }
  0x3c   : > { %987 = vmatpush.bf16.msra.mxu2 %v2238_v29  ;;  %v2568_v29 = vunpack.c.l.bf16 %v690_v19 }
  0x3e   : > { %832 = vmatpush.bf16.msra.mxu0 %v2221_v32 }
  0x3f   : > { %910 = vmatpush.bf16.msra.mxu1 %v2229_v33 }
  0x40   : > { %988 = vmatpush.bf16.msra.mxu2 %v2237_v35 }
  0x9a   : > { %v707_v24 = vpop.xlane.xlu0 %706 }
  0x9b   : > { %v710_v25 = vmul.f32 0.03125, %v707_v24 }
  0x9c   : > { %v715_v26 = vpop.xlane.xlu1 %714 }
  0x9d   : > { %v720_v30 = vmul.f32 %v710_v25, %v710_v25  ;;  %v718_v31 = vmul.f32 0.03125, %v715_v26  ;;  %v724_v55 = vsub.f32 %v2472_v2, %v710_v25  ;;  %v2560_v25 = vunpack.c.l.bf16 %v694_v13 }
  0x9e   : > { %v2562_v26 = vunpack.c.h.bf16 %v694_v13 }
  0x9f   : > { %v722_v34 = vsub.f32 %v718_v31, %v720_v30 }
  0xa1   : > { %v726_v36 = vadd.f32 1e-05, %v722_v34 }
  0xa2   : > { %v709_v37 = vpop.xlane.xlu0 %708 }
  0xa3   : > { %2284 = vrsqrt.f32 %v726_v36  ;;  %v711_v38 = vmul.f32 0.03125, %v709_v37  ;;  %vm734_vm1 = vweird.f32 %v726_v36 }
  0xa4   : > { %v717_v39 = vpop.xlane.xlu1 %716 }
  0xa5   : > { %v721_v40 = vmul.f32 %v711_v38, %v711_v38  ;;  %v719_v41 = vmul.f32 0.03125, %v717_v39  ;;  %v725_v60 = vsub.f32 %v2480_v4, %v711_v38 }
  0xa7   : > { %v723_v42 = vsub.f32 %v719_v41, %v721_v40 }
  0xa9   : > { %v2285_v43 = vpop.eup %2284  ;;  %v727_v44 = vadd.f32 1e-05, %v723_v42 }
  0xaa   : > { %v729_v45 = vmul.f32 %v2285_v43, %v726_v36  ;;  %vm735_vm0 = vweird.f32 %v2285_v43 }
  0xab   : > { %2286 = vrsqrt.f32 %v727_v44  ;;  %vm736_vm2 = vmor %vm734_vm1, %vm735_vm0  ;;  %vm744_vm4 = vweird.f32 %v727_v44 }
  0xac   : > { %v730_v46 = vmul.f32 %v2285_v43, %v729_v45 }
  0xae   : > { %v731_v47 = vmul.f32 0.5, %v730_v46 }
  0xb0   : > { %v732_v48 = vsub.f32 1.5, %v731_v47  ;;  %v2590_v47 = vunpack.c.h.bf16 %v690_v19 }
  0xb1   : > { %v2287_v49 = vpop.eup %2286 }
  0xb2   : > { %v733_v50 = vmul.f32 %v2285_v43, %v732_v48  ;;  %v739_v51 = vmul.f32 %v2287_v49, %v727_v44  ;;  %vm745_vm3 = vweird.f32 %v2287_v49 }
  0xb3   : > { %vm746_vm5 = vmor %vm744_vm4, %vm745_vm3 }
  0xb4   : > { %v740_v52 = vmul.f32 %v2287_v49, %v739_v51  ;;  %v737_v53 = vsel %vm736_vm2, %v2285_v43, %v733_v50 }
  0xb5   : > { %v748_v57 = vmul.f32 %v737_v53, %v724_v55 }
  0xb6   : > { %v741_v54 = vmul.f32 0.5, %v740_v52 }
  0xb7   : > { %v753_v63 = vmul.f32 %v2277_v58, %v748_v57 }
  0xb8   : > { %v742_v56 = vsub.f32 1.5, %v741_v54 }
  0xb9   : > { %v758_v3 = vadd.f32 %v2278_v0, %v753_v63 }
  0xba   : > { %v743_v59 = vmul.f32 %v2287_v49, %v742_v56 }
  0xbc   : > { %v747_v61 = vsel %vm746_vm5, %v2287_v49, %v743_v59 }
  0xbd   : > { %v749_v62 = vmul.f32 %v747_v61, %v725_v60 }
  0xbf   : > { %v754_v1 = vmul.f32 %v2277_v58, %v749_v62 }
  0xc1   : > { %v759_v5 = vadd.f32 %v2278_v0, %v754_v1 }
  0xc3   : > { %v776_v6 = vpack.c.bf16 %v759_v5, %v758_v3 }
  0xc5   : > { %833 = vmatmul.bf16.vlgmr.msra.gmra.mxu0 %v776_v6  ;;  %911 = vmatmul.bf16.vlgmr.msra.gmra.mxu1 %v776_v6 }
  0xc6   : > { %989 = vmatmul.bf16.vlgmr.msra.gmra.mxu2 %v776_v6 }
 0x142   : > { %v912_v11 = vpop.f32.mrf.mxu1 }
 0x143   : > { %v997_v14 = vpack.c.bf16 %v912_v11, %v912_v11 }
 0x145   : > { %v2558_v24 = vunpack.c.l.bf16 %v997_v14 }
 0x147   : > { %v1031_v30 = vmul.f32 %v2533_v12, %v2558_v24  ;;  %v1032_v31 = vmul.f32 %v2538_v15, %v2558_v24  ;;  %v1029_v32 = vmul.f32 %v2540_v16, %v2558_v24  ;;  %v1030_v33 = vmul.f32 %v2542_v17, %v2558_v24 }
 0x148   : > { %v1027_v34 = vmul.f32 %v2550_v20, %v2558_v24  ;;  %v1028_v35 = vmul.f32 %v2552_v21, %v2558_v24  ;;  %v2584_v36 = vmul.f32 %v2554_v22, %v2558_v24  ;;  %v2588_v37 = vmul.f32 %v2556_v23, %v2558_v24 }
 0x149   : > { %v990_v38 = vpop.f32.mrf.mxu2  ;;  %v1063_v39 = vpack.c.bf16 %v1031_v30, %v1031_v30  ;;  %v1064_v40 = vpack.c.bf16 %v1032_v31, %v1032_v31  ;;  %v1061_v41 = vpack.c.bf16 %v1029_v32, %v1029_v32  ;;  %v1062_v42 = vpack.c.bf16 %v1030_v33, %v1030_v33 }
 0x14a   : > { %v1081_v43 = vpack.c.bf16 %v990_v38, %v990_v38  ;;  %v914_v44 = vpop.f32.mrf.mxu1  ;;  %v1059_v45 = vpack.c.bf16 %v1027_v34, %v1027_v34  ;;  %v1060_v46 = vpack.c.bf16 %v1028_v35, %v1028_v35  ;;  %v1057_v51 = vpack.c.bf16 %v2584_v36, %v2584_v36 }
 0x14b   : > { %v998_v48 = vpack.c.bf16 %v914_v44, %v914_v44  ;;  %v1179_v49 = vunpack.c.l.b16 %v1063_v39  ;;  %v1180_v50 = vunpack.c.l.b16 %v1064_v40  ;;  %v1177_v53 = vunpack.c.l.b16 %v1061_v41 }
 0x14c   : > { %v2594_v52 = vunpack.c.l.bf16 %v1081_v43  ;;  %v1178_v54 = vunpack.c.l.b16 %v1062_v42  ;;  %v2596_v55 = vunpack.c.l.b16 %v1059_v45  ;;  %v2600_v58 = vunpack.c.l.b16 %v1060_v46 }
 0x14d   : > { %v2598_v56 = vunpack.c.l.bf16 %v998_v48  ;;  %v1188_v57 = vpack.c.b16 %v1180_v50, %v1179_v49  ;;  %v1058_v59 = vpack.c.bf16 %v2588_v37, %v2588_v37 }
 0x14e   : > { %v1099_v60 = vmul.f32 %v2594_v52, %v2533_v12  ;;  %v1100_v61 = vmul.f32 %v2594_v52, %v2538_v15  ;;  %v1187_v62 = vpack.c.b16 %v1178_v54, %v1177_v53  ;;  %v1097_v63 = vmul.f32 %v2594_v52, %v2540_v16 }
 0x14f   : > { %1197 = vmatpush.bf16.xpose.msra.mxu3 %v1188_v57  ;;  %v1047_v0 = vmul.f32 %v2533_v12, %v2598_v56  ;;  %v1048_v1 = vmul.f32 %v2538_v15, %v2598_v56  ;;  %v1098_v3 = vmul.f32 %v2594_v52, %v2542_v17  ;;  %v1095_v5 = vmul.f32 %v2594_v52, %v2550_v20 }
 0x150   : > { %v1131_v6 = vpack.c.bf16 %v1099_v60, %v1099_v60  ;;  %v1132_v7 = vpack.c.bf16 %v1100_v61, %v1100_v61  ;;  %v1129_v8 = vpack.c.bf16 %v1097_v63, %v1097_v63  ;;  %v1096_v9 = vmul.f32 %v2594_v52, %v2552_v21 }
 0x151   : > { %v992_v10 = vpop.f32.mrf.mxu2  ;;  %v1079_v11 = vpack.c.bf16 %v1047_v0, %v1047_v0  ;;  %v1080_v13 = vpack.c.bf16 %v1048_v1, %v1048_v1  ;;  %v1130_v14 = vpack.c.bf16 %v1098_v3, %v1098_v3  ;;  %v1127_v18 = vpack.c.bf16 %v1095_v5, %v1095_v5 }
 0x152   : > { %v1082_v19 = vpack.c.bf16 %v992_v10, %v992_v10  ;;  %v1314_v30 = vunpack.c.l.b16 %v1131_v6  ;;  %v1315_v31 = vunpack.c.l.b16 %v1132_v7  ;;  %v1312_v32 = vunpack.c.l.b16 %v1129_v8 }
 0x153   : > { %v1240_v33 = vunpack.c.l.b16 %v1079_v11  ;;  %v1241_v34 = vunpack.c.l.b16 %v1080_v13  ;;  %v1313_v35 = vunpack.c.l.b16 %v1130_v14  ;;  %v1128_v36 = vpack.c.bf16 %v1096_v9, %v1096_v9 }
 0x154   : > { %v2620_v38 = vunpack.c.l.bf16 %v1082_v19  ;;  %v1323_v39 = vpack.c.b16 %v1315_v31, %v1314_v30  ;;  %v1310_v40 = vunpack.c.l.b16 %v1127_v18  ;;  %v1186_v41 = vpack.c.b16 %v2600_v58, %v2596_v55 }
 0x155   : > { %v1249_v42 = vpack.c.b16 %v1241_v34, %v1240_v33  ;;  %v1322_v43 = vpack.c.b16 %v1313_v35, %v1312_v32  ;;  %v1311_v44 = vunpack.c.l.b16 %v1128_v36  ;;  %v1045_v45 = vmul.f32 %v2540_v16, %v2598_v56 }
 0x156   : > { %1332 = vmatpush.bf16.msrb.mxu1 %v1323_v39  ;;  %v1115_v46 = vmul.f32 %v2620_v38, %v2533_v12  ;;  %v1116_v48 = vmul.f32 %v2620_v38, %v2538_v15  ;;  %v1046_v49 = vmul.f32 %v2542_v17, %v2598_v56  ;;  %v1093_v50 = vmul.f32 %v2594_v52, %v2554_v22 }
 0x157   : > { %1198 = vmatpush.bf16.xpose.msra.mxu3 %v1187_v62  ;;  %1258 = vmatpush.bf16.xpose.msrb.mxu0 %v1249_v42  ;;  %v1321_v53 = vpack.c.b16 %v1311_v44, %v1310_v40  ;;  %v1077_v54 = vpack.c.bf16 %v1045_v45, %v1045_v45  ;;  %v1094_v55 = vmul.f32 %v2594_v52, %v2556_v23  ;;  %v2636_v57 = vunpack.c.l.b16 %v1057_v51 }
 0x158   : > { %v1147_v58 = vpack.c.bf16 %v1115_v46, %v1115_v46  ;;  %v1148_v12 = vpack.c.bf16 %v1116_v48, %v1116_v48  ;;  %v1078_v60 = vpack.c.bf16 %v1046_v49, %v1046_v49  ;;  %v1125_v61 = vpack.c.bf16 %v1093_v50, %v1093_v50 }
 0x159   : > { %v1238_v15 = vunpack.c.l.b16 %v1077_v54  ;;  %v1126_v63 = vpack.c.bf16 %v1094_v55, %v1094_v55  ;;  %v1113_v0 = vmul.f32 %v2620_v38, %v2540_v16  ;;  %v1114_v62 = vmul.f32 %v2620_v38, %v2542_v17 }
 0x15a   : > { %1333 = vmatpush.bf16.msrb.mxu1 %v1322_v43  ;;  %v1375_v1 = vunpack.c.l.b16 %v1147_v58  ;;  %v1376_v3 = vunpack.c.l.b16 %v1148_v12  ;;  %v1239_v5 = vunpack.c.l.b16 %v1078_v60  ;;  %v1308_v6 = vunpack.c.l.b16 %v1125_v61  ;;  %v688_v60 = vld [vmem:[%s2866_s27] sm:$0xff]  }
 0x15b   : > { %v1309_v7 = vunpack.c.l.b16 %v1126_v63  ;;  %v1145_v51 = vpack.c.bf16 %v1113_v0, %v1113_v0  ;;  %v1146_v8 = vpack.c.bf16 %v1114_v62, %v1114_v62  ;;  %v1091_v9 = vmul.f32 %v2594_v52, %v2560_v25 }
 0x15c   : > { %v1384_v10 = vpack.c.b16 %v1376_v3, %v1375_v1  ;;  %v1248_v11 = vpack.c.b16 %v1239_v5, %v1238_v15  ;;  %v1092_v13 = vmul.f32 %v2594_v52, %v2562_v26  ;;  %v1111_v16 = vmul.f32 %v2620_v38, %v2550_v20 }
 0x15d   : > { %v1320_v17 = vpack.c.b16 %v1309_v7, %v1308_v6  ;;  %v1373_v14 = vunpack.c.l.b16 %v1145_v51  ;;  %v1374_v18 = vunpack.c.l.b16 %v1146_v8  ;;  %v1123_v19 = vpack.c.bf16 %v1091_v9, %v1091_v9 }
 0x15e   : > { %1334 = vmatpush.bf16.msrb.mxu1 %v1321_v53  ;;  %1393 = vmatpush.bf16.msrb.mxu2 %v1384_v10  ;;  %v1124_v30 = vpack.c.bf16 %v1092_v13, %v1092_v13  ;;  %v1112_v31 = vmul.f32 %v2620_v38, %v2552_v21  ;;  %v1143_v32 = vpack.c.bf16 %v1111_v16, %v1111_v16  ;;  %v1174_v33 = vunpack.c.l.b16 %v1058_v59 }
 0x15f   : > { %1199 = vmatpush.bf16.xpose.msra.mxu3 %v1186_v41  ;;  %1259 = vmatpush.bf16.xpose.msrb.mxu0 %v1248_v11  ;;  %v1383_v34 = vpack.c.b16 %v1374_v18, %v1373_v14  ;;  %v1306_v35 = vunpack.c.l.b16 %v1123_v19  ;;  %v1043_v36 = vmul.f32 %v2550_v20, %v2598_v56  ;;  %v1044_v39 = vmul.f32 %v2552_v21, %v2598_v56 }
 0x160   : > { %v1307_v40 = vunpack.c.l.b16 %v1124_v30  ;;  %v1144_v42 = vpack.c.bf16 %v1112_v31, %v1112_v31  ;;  %v1371_v43 = vunpack.c.l.b16 %v1143_v32  ;;  %v1185_v44 = vpack.c.b16 %v1174_v33, %v2636_v57 }
 0x161   : > { %v1075_v45 = vpack.c.bf16 %v1043_v36, %v1043_v36  ;;  %v1076_v46 = vpack.c.bf16 %v1044_v39, %v1044_v39  ;;  %v1089_v37 = vmul.f32 %v2594_v52, %v2564_v27  ;;  %v1090_v59 = vmul.f32 %v2594_v52, %v2566_v28 }
 0x162   : > { %1335 = vmatpush.bf16.msrb.mxu1 %v1320_v17  ;;  %1394 = vmatpush.bf16.msrb.mxu2 %v1383_v34  ;;  %v1319_v41 = vpack.c.b16 %v1307_v40, %v1306_v35  ;;  %v1372_v20 = vunpack.c.l.b16 %v1144_v42  ;;  %v1109_v21 = vmul.f32 %v2620_v38, %v2554_v22  ;;  %v1110_v48 = vmul.f32 %v2620_v38, %v2556_v23 }
 0x163   : > { %v1236_v49 = vunpack.c.l.b16 %v1075_v45  ;;  %v1237_v50 = vunpack.c.l.b16 %v1076_v46  ;;  %v1121_v53 = vpack.c.bf16 %v1089_v37, %v1089_v37  ;;  %v1122_v54 = vpack.c.bf16 %v1090_v59, %v1090_v59 }
 0x164   : > { %v1382_v55 = vpack.c.b16 %v1372_v20, %v1371_v43  ;;  %v1141_v57 = vpack.c.bf16 %v1109_v21, %v1109_v21  ;;  %v1142_v58 = vpack.c.bf16 %v1110_v48, %v1110_v48  ;;  %v1087_v12 = vmul.f32 %v2594_v52, %v2568_v29 }
 0x165   : > { %v1247_v61 = vpack.c.b16 %v1237_v50, %v1236_v49  ;;  %v1304_v15 = vunpack.c.l.b16 %v1121_v53  ;;  %v1305_v63 = vunpack.c.l.b16 %v1122_v54  ;;  %v1088_v0 = vmul.f32 %v2594_v52, %v2590_v47 }
 0x166   : > { %1336 = vmatpush.bf16.msrb.mxu1 %v1319_v41  ;;  %1395 = vmatpush.bf16.msrb.mxu2 %v1382_v55  ;;  %v1369_v62 = vunpack.c.l.b16 %v1141_v57  ;;  %v1370_v1 = vunpack.c.l.b16 %v1142_v58  ;;  %v1119_v3 = vpack.c.bf16 %v1087_v12, %v1087_v12  ;;  %v1107_v5 = vmul.f32 %v2620_v38, %v2560_v25 }
 0x167   : > { %1200 = vmatpush.bf16.xpose.msra.mxu3 %v1185_v44  ;;  %1260 = vmatpush.bf16.xpose.msrb.mxu0 %v1247_v61  ;;  %v1318_v6 = vpack.c.b16 %v1305_v63, %v1304_v15  ;;  %v1120_v7 = vpack.c.bf16 %v1088_v0, %v1088_v0  ;;  %v1108_v51 = vmul.f32 %v2620_v38, %v2562_v26  ;;  %v2677_v8 = vunpack.c.l.bf16 %v688_v60 }
 0x168   : > { %v1381_v9 = vpack.c.b16 %v1370_v1, %v1369_v62  ;;  %v1302_v10 = vunpack.c.l.b16 %v1119_v3  ;;  %v1139_v11 = vpack.c.bf16 %v1107_v5, %v1107_v5  ;;  %v1023_v13 = vmul.f32 %v2560_v25, %v2558_v24 }
 0x169   : > { %v1303_v16 = vunpack.c.l.b16 %v1120_v7  ;;  %v1140_v17 = vpack.c.bf16 %v1108_v51, %v1108_v51  ;;  %v1024_v14 = vmul.f32 %v2562_v26, %v2558_v24  ;;  %v1041_v18 = vmul.f32 %v2554_v22, %v2598_v56 }
 0x16a   : > { %1337 = vmatpush.bf16.msrb.mxu1 %v1318_v6  ;;  %1396 = vmatpush.bf16.msrb.mxu2 %v1381_v9  ;;  %v1367_v19 = vunpack.c.l.b16 %v1139_v11  ;;  %v1055_v30 = vpack.c.bf16 %v1023_v13, %v1023_v13  ;;  %v1042_v31 = vmul.f32 %v2556_v23, %v2598_v56  ;;  %v2687_v32 = vunpack.c.h.bf16 %v688_v60 }
 0x16b   : > { %v1317_v33 = vpack.c.b16 %v1303_v16, %v1302_v10  ;;  %v1368_v34 = vunpack.c.l.b16 %v1140_v17  ;;  %v1056_v35 = vpack.c.bf16 %v1024_v14, %v1024_v14  ;;  %v1073_v36 = vpack.c.bf16 %v1041_v18, %v1041_v18 }
 0x16c   : > { %v1171_v39 = vunpack.c.l.b16 %v1055_v30  ;;  %v1074_v40 = vpack.c.bf16 %v1042_v31, %v1042_v31  ;;  %v1085_v42 = vmul.f32 %v2594_v52, %v2677_v8  ;;  %v1086_v22 = vmul.f32 %v2594_v52, %v2687_v32 }
 0x16d   : > { %v1380_v43 = vpack.c.b16 %v1368_v34, %v1367_v19  ;;  %v1172_v44 = vunpack.c.l.b16 %v1056_v35  ;;  %v1234_v45 = vunpack.c.l.b16 %v1073_v36  ;;  %v1105_v23 = vmul.f32 %v2620_v38, %v2564_v27 }
 0x16e   : > { %1338 = vmatpush.bf16.msrb.mxu1 %v1317_v33  ;;  %v1235_v46 = vunpack.c.l.b16 %v1074_v40  ;;  %v1117_v37 = vpack.c.bf16 %v1085_v42, %v1085_v42  ;;  %v1118_v59 = vpack.c.bf16 %v1086_v22, %v1086_v22  ;;  %v1106_v41 = vmul.f32 %v2620_v38, %v2566_v28 }
 0x16f   : > { %1397 = vmatpush.bf16.msrb.mxu2 %v1380_v43  ;;  %v1184_v20 = vpack.c.b16 %v1172_v44, %v1171_v39  ;;  %v1137_v21 = vpack.c.bf16 %v1105_v23, %v1105_v23  ;;  %v1103_v48 = vmul.f32 %v2620_v38, %v2568_v29  ;;  %v1104_v52 = vmul.f32 %v2620_v38, %v2590_v47 }
 0x170   : > { %v1246_v49 = vpack.c.b16 %v1235_v46, %v1234_v45  ;;  %v1300_v50 = vunpack.c.l.b16 %v1117_v37  ;;  %v1301_v53 = vunpack.c.l.b16 %v1118_v59  ;;  %v1138_v54 = vpack.c.bf16 %v1106_v41, %v1106_v41 }
 0x171   : > { %1201 = vmatpush.bf16.xpose.msra.mxu3 %v1184_v20  ;;  %v1365_v55 = vunpack.c.l.b16 %v1137_v21  ;;  %v1135_v57 = vpack.c.bf16 %v1103_v48, %v1103_v48  ;;  %v1136_v58 = vpack.c.bf16 %v1104_v52, %v1104_v52  ;;  %v1021_v12 = vmul.f32 %v2564_v27, %v2558_v24 }
 0x172   : > { %1261 = vmatpush.bf16.xpose.msrb.mxu0 %v1246_v49  ;;  %v1316_v60 = vpack.c.b16 %v1301_v53, %v1300_v50  ;;  %v1366_v61 = vunpack.c.l.b16 %v1138_v54  ;;  %v1022_v15 = vmul.f32 %v2566_v28, %v2558_v24  ;;  %v1039_v63 = vmul.f32 %v2560_v25, %v2598_v56 }
 0x173   : > { %v1363_v0 = vunpack.c.l.b16 %v1135_v57  ;;  %v1364_v62 = vunpack.c.l.b16 %v1136_v58  ;;  %v1053_v1 = vpack.c.bf16 %v1021_v12, %v1021_v12  ;;  %v1040_v3 = vmul.f32 %v2562_v26, %v2598_v56  ;;  %v834_v12 = vpop.f32.mrf.mxu0 }
 0x174   : > { %1339 = vmatpush.bf16.msrb.mxu1 %v1316_v60  ;;  %v1379_v5 = vpack.c.b16 %v1366_v61, %v1365_v55  ;;  %v1054_v6 = vpack.c.bf16 %v1022_v15, %v1022_v15  ;;  %v1071_v7 = vpack.c.bf16 %v1039_v63, %v1039_v63  ;;  %v1101_v51 = vmul.f32 %v2620_v38, %v2677_v8 }
 0x175   : > { %v1378_v9 = vpack.c.b16 %v1364_v62, %v1363_v0  ;;  %v1169_v10 = vunpack.c.l.b16 %v1053_v1  ;;  %v1072_v11 = vpack.c.bf16 %v1040_v3, %v1040_v3  ;;  %v1102_v13 = vmul.f32 %v2620_v38, %v2687_v32 }
 0x176   : > { %1398 = vmatpush.bf16.msrb.mxu2 %v1379_v5  ;;  %v1170_v25 = vunpack.c.l.b16 %v1054_v6  ;;  %v1232_v16 = vunpack.c.l.b16 %v1071_v7  ;;  %v1133_v17 = vpack.c.bf16 %v1101_v51, %v1101_v51  ;;  %v1019_v26 = vmul.f32 %v2568_v29, %v2558_v24  ;;  %v2219_v5 = vld [vmem:[%s2866_s27 + $0x30] sm:$0xff]  ;;  %v2218_v6 = vld [vmem:[%s2866_s27 + $0x28] sm:$0xff]  ;;  %v2217_v7 = vld [vmem:[%s2866_s27 + $0x20] sm:$0xff] }
 0x177   : > { %v1233_v14 = vunpack.c.l.b16 %v1072_v11  ;;  %v1134_v18 = vpack.c.bf16 %v1102_v13, %v1102_v13  ;;  %v1020_v19 = vmul.f32 %v2590_v47, %v2558_v24  ;;  %v1037_v30 = vmul.f32 %v2564_v27, %v2598_v56  ;;  %v2216_v51 = vld [vmem:[%s2866_s27 + $0x18] sm:$0xff]  ;;  %v2213_v11 = vld [vmem:[%s2866_s27] sm:$0xff] }
 0x178   : > { %v1183_v31 = vpack.c.b16 %v1170_v25, %v1169_v10  ;;  %v1361_v33 = vunpack.c.l.b16 %v1133_v17  ;;  %v1051_v34 = vpack.c.bf16 %v1019_v26, %v1019_v26  ;;  %v1038_v38 = vmul.f32 %v2566_v28, %v2598_v56  ;;  %v2214_v10 = vld [vmem:[%s2866_s27 + $0x8] sm:$0xff] }
 0x179   : > { %v1245_v35 = vpack.c.b16 %v1233_v14, %v1232_v16  ;;  %v1362_v36 = vunpack.c.l.b16 %v1134_v18  ;;  %v1052_v39 = vpack.c.bf16 %v1020_v19, %v1020_v19  ;;  %v1069_v40 = vpack.c.bf16 %v1037_v30, %v1037_v30 }
 0x17a   : > { %1399 = vmatpush.bf16.msrb.mxu2 %v1378_v9  ;;  %1202 = vmatpush.bf16.xpose.msra.mxu3 %v1183_v31  ;;  %v1070_v42 = vpack.c.bf16 %v1038_v38, %v1038_v38  ;;  %v1167_v22 = vunpack.c.l.b16 %v1051_v34  ;;  %v1017_v27 = vmul.f32 %v2677_v8, %v2558_v24  ;;  %v1018_v45 = vmul.f32 %v2687_v32, %v2558_v24  ;;  %v2215_v9 = vld [vmem:[%s2866_s27 + $0x10] sm:$0xff]  ;;  %v2252_v34 = vld [vmem:[%s2429_s28 + $0x38] sm:$0xff] }
 0x17b   : > { %1262 = vmatpush.bf16.xpose.msrb.mxu0 %v1245_v35  ;;  %v1377_v43 = vpack.c.b16 %v1362_v36, %v1361_v33  ;;  %v1168_v44 = vunpack.c.l.b16 %v1052_v39  ;;  %v1230_v23 = vunpack.c.l.b16 %v1069_v40  ;;  %v1035_v28 = vmul.f32 %v2568_v29, %v2598_v56  ;;  %v836_v0 = vpop.f32.mrf.mxu0  ;;  %v2251_v35 = vld [vmem:[%s2429_s28 + $0x30] sm:$0xff]  ;;  %v2250_v39 = vld [vmem:[%s2429_s28 + $0x28] sm:$0xff]  ;;  %v2249_v40 = vld [vmem:[%s2429_s28 + $0x20] sm:$0xff] }
 0x17c   : > { %v1231_v46 = vunpack.c.l.b16 %v1070_v42  ;;  %v1036_v37 = vmul.f32 %v2590_v47, %v2598_v56  ;;  %v1049_v41 = vpack.c.bf16 %v1017_v27, %v1017_v27  ;;  %v1050_v20 = vpack.c.bf16 %v1018_v45, %v1018_v45  ;;  %v2247_v27 = vld [vmem:[%s2429_s28 + $0x10] sm:$0xff] }
 0x17d   : > { %v1182_v59 = vpack.c.b16 %v1168_v44, %v1167_v22  ;;  %v1067_v48 = vpack.c.bf16 %v1035_v28, %v1035_v28  ;;  %v1033_v54 = vmul.f32 %v2677_v8, %v2598_v56  ;;  %v1034_v29 = vmul.f32 %v2687_v32, %v2598_v56  ;;  %v2220_v56 = vld [vmem:[%s2866_s27 + $0x38] sm:$0xff] }
 0x17e   : > { %1400 = vmatpush.bf16.msrb.mxu2 %v1377_v43  ;;  %v1244_v21 = vpack.c.b16 %v1231_v46, %v1230_v23  ;;  %v1068_v52 = vpack.c.bf16 %v1036_v37, %v1036_v37  ;;  %v1165_v49 = vunpack.c.l.b16 %v1049_v41  ;;  %v1166_v50 = vunpack.c.l.b16 %v1050_v20  ;;  %1454 = vmatpush.bf16.msra.mxu1 %v2220_v56  ;;  %v2248_v22 = vld [vmem:[%s2429_s28 + $0x18] sm:$0xff]  ;;  %v2246_v23 = vld [vmem:[%s2429_s28 + $0x8] sm:$0xff]  ;;  %v2245_v41 = vld [vmem:[%s2429_s28] sm:$0xff] }
 0x17f   : > { %v1228_v24 = vunpack.c.l.b16 %v1067_v48  ;;  %v1065_v57 = vpack.c.bf16 %v1033_v54, %v1033_v54  ;;  %v1066_v58 = vpack.c.bf16 %v1034_v29, %v1034_v29  ;;  %v995_v15 = vpack.c.bf16 %v834_v12, %v834_v12  ;;  %v2279_v56 = vld [vmem:[%s2868_s29] ss:$0 sm:$0xff] }
 0x180   : > { %v1229_v53 = vunpack.c.l.b16 %v1068_v52  ;;  %v1181_v47 = vpack.c.b16 %v1166_v50, %v1165_v49  ;;  %v996_v62 = vpack.c.bf16 %v836_v0, %v836_v0 }
 0x181   : > { %v1226_v60 = vunpack.c.l.b16 %v1065_v57  ;;  %v1227_v61 = vunpack.c.l.b16 %v1066_v58 }
 0x182   : > { %1203 = vmatpush.bf16.xpose.msra.mxu3 %v1182_v59  ;;  %v1243_v55 = vpack.c.b16 %v1229_v53, %v1228_v24  ;;  %1455 = vmatpush.bf16.msra.mxu1 %v2219_v5 }
 0x183   : > { %1263 = vmatpush.bf16.xpose.msrb.mxu0 %v1244_v21  ;;  %v1242_v63 = vpack.c.b16 %v1227_v61, %v1226_v60  ;;  %1569 = vmatpush.bf16.msra.mxu2 %v2252_v34  ;;  %v2257_v34 = vld [vmem:[%s2442_s8 + $0x20] sm:$0xff] }
 0x186   : > { %1456 = vmatpush.bf16.msra.mxu1 %v2218_v6 }
 0x187   : > { %1570 = vmatpush.bf16.msra.mxu2 %v2251_v35  ;;  %v2267_v35 = vld [vmem:[%s2451_s7 + $0x30] sm:$0xff] }
 0x18a   : > { %1204 = vmatpush.bf16.xpose.msra.mxu3 %v1181_v47  ;;  %1457 = vmatpush.bf16.msra.mxu1 %v2217_v7 }
 0x18b   : > { %1264 = vmatpush.bf16.xpose.msrb.mxu0 %v1243_v55  ;;  %1571 = vmatpush.bf16.msra.mxu2 %v2250_v39 }
 0x18e   : > { %1458 = vmatpush.bf16.msra.mxu1 %v2216_v51 }
 0x18f   : > { %1572 = vmatpush.bf16.msra.mxu2 %v2249_v40 }
 0x191   : > { %1205 = vmatmul.bf16.vlgmr.msra.gmra.mxu3 %v995_v15 }
 0x192   : > { %1459 = vmatpush.bf16.msra.mxu1 %v2215_v9 }
 0x193   : > { %1265 = vmatpush.bf16.xpose.msrb.mxu0 %v1242_v63  ;;  %1573 = vmatpush.bf16.msra.mxu2 %v2248_v22  ;;  %v2266_v22 = vld [vmem:[%s2451_s7 + $0x28] sm:$0xff] }
 0x196   : > { %1460 = vmatpush.bf16.msra.mxu1 %v2214_v10 }
 0x197   : > { %1574 = vmatpush.bf16.msra.mxu2 %v2247_v27  ;;  %v2255_v27 = vld [vmem:[%s2442_s8 + $0x10] sm:$0xff] }
 0x19a   : > { %1266 = vmatmul.bf16.vlgmr.msrb.gmra.mxu0 %v996_v62  ;;  %1461 = vmatpush.bf16.msra.mxu1 %v2213_v11  ;;  %v2260_v11 = vld [vmem:[%s2442_s8 + $0x38] sm:$0xff] }
 0x19b   : > { %1575 = vmatpush.bf16.msra.mxu2 %v2246_v23  ;;  %1710 = vmatpush.bf16.msrb.mxu3 %v2260_v11 }
 0x19f   : > { %1576 = vmatpush.bf16.msra.mxu2 %v2245_v41 }
 0x214   : > { %v1206_v8 = vpop.f32.mrf.mxu3 }
 0x215   : > { %1271 = vmax.xlane.f32.xlu2 %v1206_v8 }
 0x217   : > { %v1267_v32 = vpop.f32.mrf.mxu0 }
 0x21c   : > { %v1208_v1 = vpop.f32.mrf.mxu3 }
 0x21d   : > { %1273 = vmax.xlane.f32.xlu2 %v1267_v32 }
 0x21f   : > { %v1269_v3 = vpop.f32.mrf.mxu0 }
 0x288   : > { %v1272_v13 = vpop.xlane.xlu2 %1271 }
 0x289   : > { %v1275_v25 = vsub.f32 %v1206_v8, %v1272_v13 }
 0x28b   : > { %v1277_v16 = vmul.f32 1.442695, %v1275_v25 }
 0x28d   : > { %2288 = vpow2.f32 %v1277_v16  ;;  %v2259_v16 = vld [vmem:[%s2442_s8 + $0x30] sm:$0xff] }
 0x28e   : > { %1711 = vmatpush.bf16.msrb.mxu3 %v2259_v16 }
 0x290   : > { %v1274_v17 = vpop.xlane.xlu2 %1273 }
 0x291   : > { %v1276_v26 = vsub.f32 %v1267_v32, %v1274_v17 }
 0x293   : > { %v2289_v14 = vpop.eup %2288  ;;  %v1279_v18 = vmul.f32 1.442695, %v1276_v26 }
 0x294   : > { %v1281_v19 = vpack.c.bf16 %v2289_v14, %v2289_v14 }
 0x295   : > { %2290 = vpow2.f32 %v1279_v18 }
 0x296   : > { %1340 = vmatmul.bf16.vlgmr.msrb.gmra.mxu1 %v1281_v19 }
 0x29b   : > { %v2291_v30 = vpop.eup %2290 }
 0x29c   : > { %v1282_v31 = vpack.c.bf16 %v2291_v30, %v2291_v30  ;;  %v1283_v33 = vpack.c.bf16 %v2291_v30, %v2289_v14  ;;  %v2258_v14 = vld [vmem:[%s2442_s8 + $0x28] sm:$0xff] }
 0x29d   : > { %1712 = vmatpush.bf16.msrb.mxu3 %v2258_v14 }
 0x29e   : > { %1401 = vmatmul.bf16.vlgmr.msrb.gmra.mxu2 %v1282_v31 }
 0x2a1   : > { %1713 = vmatpush.bf16.msrb.mxu3 %v2257_v34 }
 0x2a6   : > { %1462 = vmatmul.bf16.vlgmr.msra.gmra.mxu1 %v1283_v33  ;;  %v2268_v33 = vld [vmem:[%s2451_s7 + $0x38] sm:$0xff] }
 0x2a7   : > { %1795 = vmatpush.bf16.msra.mxu0 %v2268_v33 }
 0x2ab   : > { %1796 = vmatpush.bf16.msra.mxu0 %v2267_v35 }
 0x2af   : > { %1797 = vmatpush.bf16.msra.mxu0 %v2266_v22 }
 0x313   : > { %v1341_v38 = vpop.f32.mrf.mxu1 }
 0x31b   : > { %v1343_v36 = vpop.f32.mrf.mxu1 }
 0x321   : > { %v1402_v42 = vpop.f32.mrf.mxu2 }
 0x323   : > { %v1463_v43 = vpop.f32.mrf.mxu1 }
 0x324   : > { %v1468_v44 = vmax.f32 %v1463_v43, 1e-30 }
 0x326   : > { %2292 = vrcp.f32 %v1468_v44  ;;  %v1481_v50 = vand.u32 2147483648, %v1468_v44  ;;  %vm1475_vm7 = vweird.f32 %v1468_v44  ;;  %v1479_v24 = vand.u32 2147483647, %v1468_v44 }
 0x328   : > { %v1482_v57 = vor.u32 1.1754944e-38, %v1481_v50  ;;  %vm1480_vm11 = vcmp.eq.f32.partialorder %v1479_v24, 8.507059e+37  ;;  %v2280_v24 = vld [vmem:[%s2869_s24] ss:$0 sm:$0xff] }
 0x329   : > { %v1404_v45 = vpop.f32.mrf.mxu2 }
 0x32a   : > { %v2265_v45 = vld [vmem:[%s2451_s7 + $0x20] sm:$0xff] }
 0x32b   : > { %v1465_v46 = vpop.f32.mrf.mxu1  ;;  %1798 = vmatpush.bf16.msra.mxu0 %v2265_v45 }
 0x32c   : > { %v2293_v28 = vpop.eup %2292  ;;  %v1469_v37 = vmax.f32 %v1465_v46, 1e-30 }
 0x32d   : > { %v1471_v59 = vmul.f32 %v2293_v28, %v1468_v44  ;;  %vm1476_vm6 = vweird.f32 %v2293_v28 }
 0x32e   : > { %2294 = vrcp.f32 %v1469_v37  ;;  %vm1477_vm8 = vmor %vm1475_vm7, %vm1476_vm6  ;;  %v1495_v54 = vand.u32 2147483648, %v1469_v37  ;;  %v1493_v47 = vand.u32 2147483647, %v1469_v37  ;;  %vm1489_vm10 = vweird.f32 %v1469_v37 }
 0x32f   : > { %v1472_v20 = vsub.f32 1.0, %v1471_v59  ;;  %v2254_v59 = vld [vmem:[%s2442_s8 + $0x8] sm:$0xff] }
 0x330   : > { %v1496_v12 = vor.u32 1.1754944e-38, %v1495_v54  ;;  %vm1494_vm13 = vcmp.eq.f32.partialorder %v1493_v47, 8.507059e+37 }
 0x331   : > { %v1473_v21 = vmul.f32 %v2293_v28, %v1472_v20 }
 0x333   : > { %v1474_v49 = vadd.f32 %v2293_v28, %v1473_v21 }
 0x334   : > { %v2295_v48 = vpop.eup %2294 }
 0x335   : > { %v1485_v52 = vmul.f32 %v2295_v48, %v1469_v37  ;;  %vm1490_vm9 = vweird.f32 %v2295_v48  ;;  %v1478_v55 = vsel %vm1477_vm8, %v2293_v28, %v1474_v49 }
 0x336   : > { %vm1491_vm12 = vmor %vm1489_vm10, %vm1490_vm9  ;;  %v1483_v60 = vsel %vm1480_vm11, %v1482_v57, %v1478_v55  ;;  %v2281_v57 = vld [vmem:[%s661_s18] ss:$0 sm:$0xff] }
 0x337   : > { %v1486_v53 = vsub.f32 1.0, %v1485_v52  ;;  %v1498_v63 = vmul.f32 %v1483_v60, %v1341_v38 }
 0x339   : > { %v1487_v29 = vmul.f32 %v2295_v48, %v1486_v53 }
 0x33b   : > { %v1488_v58 = vadd.f32 %v2295_v48, %v1487_v29 }
 0x33d   : > { %v1492_v61 = vsel %vm1491_vm12, %v2295_v48, %v1488_v58  ;;  %v2253_v48 = vld [vmem:[%s2442_s8] sm:$0xff] }
 0x33e   : > { %v1497_v15 = vsel %vm1494_vm13, %v1496_v12, %v1492_v61 }
 0x33f   : > { %v1499_v0 = vmul.f32 %v1497_v15, %v1402_v42  ;;  %v2256_v42 = vld [vmem:[%s2442_s8 + $0x18] sm:$0xff] }
 0x340   : > { %1714 = vmatpush.bf16.msrb.mxu3 %v2256_v42  ;;  %v2264_v15 = vld [vmem:[%s2451_s7 + $0x18] sm:$0xff] }
 0x341   : > { %v1516_v62 = vpack.c.bf16 %v1499_v0, %v1498_v63  ;;  %1799 = vmatpush.bf16.msra.mxu0 %v2264_v15  ;;  %v2263_v63 = vld [vmem:[%s2451_s7 + $0x10] sm:$0xff]  ;;  %v2262_v0 = vld [vmem:[%s2451_s7 + $0x8] sm:$0xff] }
 0x343   : > { %1577 = vmatmul.bf16.vlgmr.msra.gmra.mxu2 %v1516_v62  ;;  %v2261_v62 = vld [vmem:[%s2451_s7] sm:$0xff] }
 0x344   : > { %1715 = vmatpush.bf16.msrb.mxu3 %v2255_v27 }
 0x345   : > { %1800 = vmatpush.bf16.msra.mxu0 %v2263_v63 }
 0x348   : > { %1716 = vmatpush.bf16.msrb.mxu3 %v2254_v59 }
 0x349   : > { %1801 = vmatpush.bf16.msra.mxu0 %v2262_v0 }
 0x34c   : > { %1717 = vmatpush.bf16.msrb.mxu3 %v2253_v48 }
 0x34d   : > { %1802 = vmatpush.bf16.msra.mxu0 %v2261_v62 }
 0x3c6   : > { %v1578_v8 = vpop.f32.mrf.mxu2 }
 0x3c7   : > { %v1579_v32 = vadd.f32 %v2279_v56, %v1578_v8  ;;  %v2282_v8 = vld [vmem:[%s669_s6] ss:$0 sm:$0xff] }
 0x3c9   : > { %v2771_v1 = vadd.f32 %v1579_v32, %v2472_v2 }
 0x3cb   : > { %1587 = vadd.xlane.f32.xlu0 %v2771_v1  ;;  %v1593_v3 = vmul.f32 %v2771_v1, %v2771_v1 }
 0x3cd   : > { %1595 = vadd.xlane.f32.xlu2 %v1593_v3 }
 0x3ce   : > { %v1580_v5 = vpop.f32.mrf.mxu2 }
 0x3cf   : > { %v1581_v6 = vadd.f32 %v2279_v56, %v1580_v5 }
 0x3d1   : > { %v2777_v7 = vadd.f32 %v1581_v6, %v2480_v4 }
 0x3d3   : > { %1589 = vadd.xlane.f32.xlu1 %v2777_v7  ;;  %v1594_v51 = vmul.f32 %v2777_v7, %v2777_v7 }
 0x3d5   : > { %1597 = vadd.xlane.f32.xlu0 %v1594_v51 }
 0x43e   : > { %v1588_v2 = vpop.xlane.xlu0 %1587 }
 0x43f   : > { %v1591_v9 = vmul.f32 0.03125, %v1588_v2 }
 0x440   : > { %v1596_v10 = vpop.xlane.xlu2 %1595 }
 0x441   : > { %v1601_v13 = vmul.f32 %v1591_v9, %v1591_v9  ;;  %v1599_v25 = vmul.f32 0.03125, %v1596_v10  ;;  %v1605_v52 = vsub.f32 %v2771_v1, %v1591_v9  ;;  %v2283_v9 = vld [vmem:[%s677_s16] ss:$0 sm:$0xff] }
 0x443   : > { %v1603_v4 = vsub.f32 %v1599_v25, %v1601_v13 }
 0x445   : > { %v1607_v17 = vadd.f32 1e-05, %v1603_v4 }
 0x446   : > { %v1590_v26 = vpop.xlane.xlu1 %1589 }
 0x447   : > { %2296 = vrsqrt.f32 %v1607_v17  ;;  %v1592_v18 = vmul.f32 0.03125, %v1590_v26  ;;  %vm1615_vm15 = vweird.f32 %v1607_v17 }
 0x448   : > { %v1598_v19 = vpop.xlane.xlu0 %1597 }
 0x449   : > { %v1602_v30 = vmul.f32 %v1592_v18, %v1592_v18  ;;  %v1600_v31 = vmul.f32 0.03125, %v1598_v19  ;;  %v1606_v54 = vsub.f32 %v2777_v7, %v1592_v18 }
 0x44b   : > { %v1604_v38 = vsub.f32 %v1600_v31, %v1602_v30 }
 0x44d   : > { %v2297_v36 = vpop.eup %2296  ;;  %v1608_v39 = vadd.f32 1e-05, %v1604_v38 }
 0x44e   : > { %v1610_v40 = vmul.f32 %v2297_v36, %v1607_v17  ;;  %vm1616_vm14 = vweird.f32 %v2297_v36 }
 0x44f   : > { %2298 = vrsqrt.f32 %v1608_v39  ;;  %vm1617_vm0 = vmor %vm1615_vm15, %vm1616_vm14  ;;  %vm1625_vm2 = vweird.f32 %v1608_v39 }
 0x450   : > { %v1611_v43 = vmul.f32 %v2297_v36, %v1610_v40 }
 0x452   : > { %v1612_v44 = vmul.f32 0.5, %v1611_v43 }
 0x454   : > { %v1613_v23 = vsub.f32 1.5, %v1612_v44 }
 0x455   : > { %v2299_v46 = vpop.eup %2298 }
 0x456   : > { %v1614_v28 = vmul.f32 %v2297_v36, %v1613_v23  ;;  %v1620_v37 = vmul.f32 %v2299_v46, %v1608_v39  ;;  %vm1626_vm1 = vweird.f32 %v2299_v46 }
 0x457   : > { %vm1627_vm3 = vmor %vm1625_vm2, %vm1626_vm1 }
 0x458   : > { %v1621_v41 = vmul.f32 %v2299_v46, %v1620_v37  ;;  %v1618_v20 = vsel %vm1617_vm0, %v2297_v36, %v1614_v28 }
 0x459   : > { %v1629_v50 = vmul.f32 %v1618_v20, %v1605_v52 }
 0x45a   : > { %v1622_v21 = vmul.f32 0.5, %v1621_v41 }
 0x45b   : > { %v1634_v55 = vmul.f32 %v2280_v24, %v1629_v50 }
 0x45c   : > { %v1623_v49 = vsub.f32 1.5, %v1622_v21 }
 0x45d   : > { %v1639_v12 = vadd.f32 %v2281_v57, %v1634_v55 }
 0x45e   : > { %v1624_v53 = vmul.f32 %v2299_v46, %v1623_v49 }
 0x460   : > { %v1628_v29 = vsel %vm1627_vm3, %v2299_v46, %v1624_v53 }
 0x461   : > { %v1630_v47 = vmul.f32 %v1628_v29, %v1606_v54 }
 0x463   : > { %v1635_v58 = vmul.f32 %v2280_v24, %v1630_v47 }
 0x465   : > { %v1640_v60 = vadd.f32 %v2281_v57, %v1635_v58 }
 0x467   : > { %v1657_v61 = vpack.c.bf16 %v1640_v60, %v1639_v12 }
 0x469   : > { %1718 = vmatmul.bf16.vlgmr.msrb.gmra.mxu3 %v1657_v61 }
 0x4ec   : > { %v1719_v56 = vpop.f32.mrf.mxu3 }
 0x4ed   : > { %v1720_v32 = vadd.f32 %v2282_v8, %v1719_v56 }
 0x4ef   : > { %v1724_v6 = vmax.f32 %v1720_v32, 0.0 }
 0x4f4   : > { %v1721_v3 = vpop.f32.mrf.mxu3 }
 0x4f5   : > { %v1722_v5 = vadd.f32 %v2282_v8, %v1721_v3 }
 0x4f7   : > { %v1725_v51 = vmax.f32 %v1722_v5, 0.0 }
 0x4f9   : > { %v1742_v2 = vpack.c.bf16 %v1725_v51, %v1724_v6 }
 0x4fb   : > { %1803 = vmatmul.bf16.vlgmr.msra.gmra.mxu0 %v1742_v2 }
 0x578   : > { %v1804_v10 = vpop.f32.mrf.mxu0 }
 0x579   : > { %v1805_v11 = vadd.f32 %v2283_v9, %v1804_v10 }
 0x57b   : > { %v1809_v13 = vadd.f32 %v1805_v11, %v2771_v1 }
 0x57d   : > { %1811 = vst [vmem:[%s2846_s15] sm:$0xff] %v1809_v13 }
 0x580   : > { %v1806_v25 = vpop.f32.mrf.mxu0 }
 0x581   : > { %v1807_v16 = vadd.f32 %v2283_v9, %v1806_v25 }
 0x583   : > { %v1810_v4 = vadd.f32 %v1807_v16, %v2777_v7 }
 0x585   : > { %1812 = vst [vmem:[%s2846_s15 + $0x8] sm:$0xff] %v1810_v4 }
 0x586 PF: > { %s2870_s26 = sld [smem:[#allocation2_spill]] }
 0x58c   : > { %s25_s18 = sadd.s32 1, %s2870_s26  }
 0x58d   : > { %p22_p5 = scmp.ge.s32.totalorder %s25_s18, 4  }
 0x58f   :  { %24 = sbr.rel (!%p22_p5) target bundleno = 8 (0x8), region = 146 }

</bundles_post_ra>
